<compile_context>
chip_gen: v5e
topology: v5e:2x2
jax: 0.10.0
libtpu: 0.0.40
codegen_flags: <defaults>
</compile_context>

<pallas_src>
import jax
import jax.numpy as jnp
from jax import lax
from jax.experimental import pallas as pl
from jax.experimental.pallas import tpu as pltpu

LANE = 128


def _round_up(x, m):
    return (x + m - 1) // m * m


def _pick_row_tile(H):
    for t in (8, 4, 2, 1):
        if H % t == 0:
            return t
    return 1


# ---------------------------------------------------------------------------
# Fused bottleneck kernel
# ---------------------------------------------------------------------------

def _bottleneck_fused_kernel(xt_ref, xm_ref, xb_ref,
                             w1_ref, w2_ref, w3_ref,
                             s1_ref, b1_ref, s2_ref, b2_ref, s3_ref, b3_ref,
                             o_ref):
    # xt/xb: (1, 1, W, Cin)   halo rows (row index clamped at image edges)
    # xm:    (1, TH, W, Cin)  body rows of this tile
    # w1: (Cin, Cw)  w2: (3, 3*Cw, Cw)  w3: (Cw, Cexp)   (all bf16)
    # s*/b*: (1, C) f32 folded BatchNorm;  o: (1, TH, W, Cexp) f32
    f32 = jnp.float32
    _, TH, W, Cin = xm_ref.shape
    Cw = w1_ref.shape[1]
    Cexp = w3_ref.shape[1]
    t = pl.program_id(1)
    nt = pl.num_programs(1)

    top = xt_ref[0]                                   # (1, W, Cin)
    mid = xm_ref[0]                                   # (TH, W, Cin)
    bot = xb_ref[0]                                   # (1, W, Cin)
    xt = jnp.concatenate([top, mid, bot], axis=0)     # (TH+2, W, Cin)

    # ---- conv1 (1x1) + bn1 + relu on all TH+2 rows (halo rows recomputed) --
    a1 = jnp.dot(xt.reshape((TH + 2) * W, Cin), w1_ref[...],
                 preferred_element_type=f32)
    h1 = jnp.maximum(a1 * s1_ref[...] + b1_ref[...], 0.0)
    h1 = h1.astype(jnp.bfloat16).reshape(TH + 2, W, Cw)

    # Zero halo rows that fall outside the image (conv2's zero padding in H).
    rows = lax.broadcasted_iota(jnp.int32, (TH + 2, 1, 1), 0)
    keep = jnp.logical_and(jnp.logical_or(rows != 0, t > 0),
                           jnp.logical_or(rows != TH + 1, t < nt - 1))
    h1 = jnp.where(keep, h1, jnp.zeros_like(h1))

    # Zero padding along W (conv2 padding=1).
    zcol = jnp.zeros((TH + 2, 1, Cw), jnp.bfloat16)
    hp = jnp.concatenate([zcol, h1, zcol], axis=1)    # (TH+2, W+2, Cw)

    # ---- conv2 (3x3) as 3 fat matmuls (K = 3*Cw), one per dy tap -----------
    acc = jnp.zeros((TH * W, Cw), f32)
    for dy in range(3):
        slab = hp[dy:dy + TH]                         # (TH, W+2, Cw)
        patch = jnp.concatenate(
            [slab[:, 0:W], slab[:, 1:W + 1], slab[:, 2:W + 2]], axis=-1)
        acc = acc + jnp.dot(patch.reshape(TH * W, 3 * Cw), w2_ref[dy],
                            preferred_element_type=f32)
    h2 = jnp.maximum(acc * s2_ref[...] + b2_ref[...], 0.0)
    h2 = h2.astype(jnp.bfloat16)                      # (TH*W, Cw)

    # ---- conv3 (1x1) + bn3 + residual + relu -------------------------------
    a3 = jnp.dot(h2, w3_ref[...], preferred_element_type=f32)
    res = mid.reshape(TH * W, Cin).astype(f32)        # Cin == Cexp (padded)
    out = jnp.maximum(a3 * s3_ref[...] + b3_ref[...] + res, 0.0)
    o_ref[0] = out.reshape(TH, W, Cexp).astype(o_ref.dtype)


# ---------------------------------------------------------------------------
# Wrapper
# ---------------------------------------------------------------------------

def bottleneck_forward(x_nchw, params, row_tile=None):
    """x_nchw: (N, Cin, H, W) f32.  Returns (N, Cout*4, H, W) f32."""
    (w1, s1, b1, w2, s2, b2, w3, s3, b3) = params
    N, Cin, H, W = x_nchw.shape
    Cw = w1.shape[1]
    Cexp = w3.shape[1]
    if Cin != Cexp:
        raise ValueError("identity Bottleneck requires in_channels == "
                         "out_channels * 4 (stride=1, downsample=None)")

    cin_p = _round_up(Cin, LANE)
    cw_p = _round_up(Cw, LANE)
    cexp_p = _round_up(Cexp, LANE)
    assert cin_p == cexp_p

    # Layout / dtype plumbing: NCHW -> NHWC, lane-pad channels, bf16 operands.
    x_nhwc = jnp.transpose(x_nchw, (0, 2, 3, 1))
    x_b = jnp.pad(x_nhwc,
                  ((0, 0), (0, 0), (0, 0), (0, cin_p - Cin))).astype(jnp.bfloat16)

    w1_b = jnp.pad(w1, ((0, cin_p - Cin), (0, cw_p - Cw))).astype(jnp.bfloat16)
    w2_b = jnp.pad(w2, ((0, 0), (0, 0), (0, cw_p - Cw), (0, cw_p - Cw)))
    w2_b = w2_b.reshape(3, 3 * cw_p, cw_p).astype(jnp.bfloat16)   # (dy, dx*Cin, Cout)
    w3_b = jnp.pad(w3, ((0, cw_p - Cw), (0, cexp_p - Cexp))).astype(jnp.bfloat16)

    pad_c = lambda a, cp: jnp.pad(a, ((0, 0), (0, cp - a.shape[1])))
    s1_p, b1_p = pad_c(s1, cw_p), pad_c(b1, cw_p)
    s2_p, b2_p = pad_c(s2, cw_p), pad_c(b2, cw_p)
    s3_p, b3_p = pad_c(s3, cexp_p), pad_c(b3, cexp_p)

    TH = row_tile or _pick_row_tile(H)
    if H % TH != 0:
        raise ValueError(f"row_tile {TH} must divide H={H}")
    grid = (N, H // TH)

    def full(shape):
        return pl.BlockSpec(shape, lambda n, t: (0,) * len(shape))

    x_top = pl.BlockSpec((1, 1, W, cin_p),
                         lambda n, t: (n, jnp.maximum(t * TH - 1, 0), 0, 0))
    x_mid = pl.BlockSpec((1, TH, W, cin_p), lambda n, t: (n, t, 0, 0))
    x_bot = pl.BlockSpec((1, 1, W, cin_p),
                         lambda n, t: (n, jnp.minimum(t * TH + TH, H - 1), 0, 0))

    y = pl.pallas_call(
        _bottleneck_fused_kernel,
        out_shape=jax.ShapeDtypeStruct((N, H, W, cexp_p), jnp.float32),
        grid=grid,
        in_specs=[
            x_top, x_mid, x_bot,
            full((cin_p, cw_p)), full((3, 3 * cw_p, cw_p)), full((cw_p, cexp_p)),
            full((1, cw_p)), full((1, cw_p)),
            full((1, cw_p)), full((1, cw_p)),
            full((1, cexp_p)), full((1, cexp_p)),
        ],
        out_specs=pl.BlockSpec((1, TH, W, cexp_p), lambda n, t: (n, t, 0, 0)),
        compiler_params=pltpu.CompilerParams(
            dimension_semantics=("parallel", "parallel")),
    )(x_b, x_b, x_b, w1_b, w2_b, w3_b, s1_p, b1_p, s2_p, b2_p, s3_p, b3_p)

    y = y[..., :Cexp]
    return jnp.transpose(y, (0, 3, 1, 2))


# ---------------------------------------------------------------------------
# Parameters (BatchNorm folded, eval-mode semantics)
# ---------------------------------------------------------------------------

def fold_bn(gamma, beta, mean, var, eps=1e-5):
    scale = gamma / jnp.sqrt(var + eps)
    bias = beta - mean * scale
    return scale[None, :], bias[None, :]                    # (1, C)


def make_params(key, in_channels, out_channels, base_width=64, groups=1):
    width = int(out_channels * (base_width / 64.0)) * groups
    exp_out = out_channels * 4
    ks = jax.random.split(key, 12)
    w1 = jax.random.normal(ks[0], (in_channels, width), jnp.float32) * 0.1
    w2 = jax.random.normal(ks[1], (3, 3, width, width), jnp.float32) * 0.1
    w3 = jax.random.normal(ks[2], (width, exp_out), jnp.float32) * 0.1

    def bn_params(k, c):
        k1, k2, k3, k4 = jax.random.split(k, 4)
        gamma = 1.0 + 0.1 * jax.random.normal(k1, (c,), jnp.float32)
        beta = 0.1 * jax.random.normal(k2, (c,), jnp.float32)
        mean = 0.1 * jax.random.normal(k3, (c,), jnp.float32)
        var = 0.5 + jax.random.uniform(k4, (c,), jnp.float32)
        return fold_bn(gamma, beta, mean, var)

    s1, b1 = bn_params(ks[3], width)
    s2, b2 = bn_params(ks[4], width)
    s3, b3 = bn_params(ks[5], exp_out)
    return (w1, s1, b1, w2, s2, b2, w3, s3, b3)


# ---------------------------------------------------------------------------
# Pure-JAX reference (mirrors the bf16 operand rounding used by the kernel)
# ---------------------------------------------------------------------------

def ref_forward(x_nchw, params):
    (w1, s1, b1, w2, s2, b2, w3, s3, b3) = params
    bf = lambda a: a.astype(jnp.bfloat16).astype(jnp.float32)
    x = bf(jnp.transpose(x_nchw, (0, 2, 3, 1)))
    h = jnp.maximum(jnp.einsum('nhwc,cd->nhwd', x, bf(w1)) * s1 + b1, 0.0)
    h = bf(h)
    H, W = h.shape[1], h.shape[2]
    hp = jnp.pad(h, ((0, 0), (1, 1), (1, 1), (0, 0)))
    acc = jnp.zeros(h.shape, jnp.float32)
    for dy in range(3):
        for dx in range(3):
            acc = acc + jnp.einsum('nhwc,cd->nhwd',
                                   hp[:, dy:dy + H, dx:dx + W, :], bf(w2[dy, dx]))
    h2 = bf(jnp.maximum(acc * s2 + b2, 0.0))
    out = jnp.einsum('nhwc,cd->nhwd', h2, bf(w3)) * s3 + b3
    out = jnp.maximum(out + x, 0.0)
    return jnp.transpose(out, (0, 3, 1, 2))


# ---------------------------------------------------------------------------

if __name__ == "__main__":
    key = jax.random.PRNGKey(0)
    k_x, k_p = jax.random.split(key)

    # Identity bottleneck: in_channels == out_channels * expansion, stride=1.
    N, H, W = 2, 16, 16
    out_channels = 4
    in_channels = out_channels * 4          # 16

    params = make_params(k_p, in_channels, out_channels)
    x = jax.random.normal(k_x, (N, in_channels, H, W), jnp.float32)

    y = jax.jit(bottleneck_forward)(x, params)
    jax.block_until_ready(y)

    y_ref = ref_forward(x, params)
    assert y.shape == (N, out_channels * 4, H, W)
    max_err = float(jnp.max(jnp.abs(y - y_ref)))
    assert jnp.allclose(y, y_ref, atol=2e-3, rtol=2e-3), \
        f"mismatch vs reference, max abs err = {max_err}"

    print("KERNEL_OK")
</pallas_src>

<mosaic_0001>
module attributes {stable_mosaic.version = 11 : i64} {
  func.func @_bottleneck_fused_kernel(%arg0: i32, %arg1: i32, %arg2: memref<1x1x16x128xbf16, #tpu.memory_space<vmem>>, %arg3: memref<1x8x16x128xbf16, #tpu.memory_space<vmem>>, %arg4: memref<1x1x16x128xbf16, #tpu.memory_space<vmem>>, %arg5: memref<128x128xbf16, #tpu.memory_space<vmem>>, %arg6: memref<3x384x128xbf16, #tpu.memory_space<vmem>>, %arg7: memref<128x128xbf16, #tpu.memory_space<vmem>>, %arg8: memref<1x128xf32, #tpu.memory_space<vmem>>, %arg9: memref<1x128xf32, #tpu.memory_space<vmem>>, %arg10: memref<1x128xf32, #tpu.memory_space<vmem>>, %arg11: memref<1x128xf32, #tpu.memory_space<vmem>>, %arg12: memref<1x128xf32, #tpu.memory_space<vmem>>, %arg13: memref<1x128xf32, #tpu.memory_space<vmem>>, %arg14: memref<1x8x16x128xf32, #tpu.memory_space<vmem>>) attributes {dimension_semantics = [#tpu.dimension_semantics<parallel>, #tpu.dimension_semantics<parallel>], iteration_bounds = array<i64: 2, 2>, scalar_prefetch = 0 : i64, scratch_operands = 0 : i64, tpu.core_type = #tpu.core_type<tc>, window_params = [{transform_indices = @transform_0, window_bounds = array<i64: 1, 1, 16, 128>}, {transform_indices = @transform_1, window_bounds = array<i64: 1, 8, 16, 128>}, {transform_indices = @transform_2, window_bounds = array<i64: 1, 1, 16, 128>}, {pipeline_mode = #tpu.pipeline_mode<synchronous>, transform_indices = @transform_3, window_bounds = array<i64: 128, 128>}, {pipeline_mode = #tpu.pipeline_mode<synchronous>, transform_indices = @transform_4, window_bounds = array<i64: 3, 384, 128>}, {pipeline_mode = #tpu.pipeline_mode<synchronous>, transform_indices = @transform_5, window_bounds = array<i64: 128, 128>}, {pipeline_mode = #tpu.pipeline_mode<synchronous>, transform_indices = @transform_6, window_bounds = array<i64: 1, 128>}, {pipeline_mode = #tpu.pipeline_mode<synchronous>, transform_indices = @transform_7, window_bounds = array<i64: 1, 128>}, {pipeline_mode = #tpu.pipeline_mode<synchronous>, transform_indices = @transform_8, window_bounds = array<i64: 1, 128>}, {pipeline_mode = #tpu.pipeline_mode<synchronous>, transform_indices = @transform_9, window_bounds = array<i64: 1, 128>}, {pipeline_mode = #tpu.pipeline_mode<synchronous>, transform_indices = @transform_10, window_bounds = array<i64: 1, 128>}, {pipeline_mode = #tpu.pipeline_mode<synchronous>, transform_indices = @transform_11, window_bounds = array<i64: 1, 128>}, {transform_indices = @transform_12, window_bounds = array<i64: 1, 8, 16, 128>}]} {
    %c0 = arith.constant 0 : index
    %c0_0 = arith.constant 0 : index
    %c0_1 = arith.constant 0 : index
    %c0_2 = arith.constant 0 : index
    %0 = vector.load %arg2[%c0, %c0_0, %c0_1, %c0_2] : memref<1x1x16x128xbf16, #tpu.memory_space<vmem>>, vector<1x1x16x128xbf16>
    %1 = vector.shape_cast %0 : vector<1x1x16x128xbf16> to vector<1x16x128xbf16>
    %c0_3 = arith.constant 0 : index
    %c0_4 = arith.constant 0 : index
    %c0_5 = arith.constant 0 : index
    %c0_6 = arith.constant 0 : index
    %2 = vector.load %arg3[%c0_3, %c0_4, %c0_5, %c0_6] : memref<1x8x16x128xbf16, #tpu.memory_space<vmem>>, vector<1x8x16x128xbf16>
    %3 = vector.shape_cast %2 : vector<1x8x16x128xbf16> to vector<8x16x128xbf16>
    %c0_7 = arith.constant 0 : index
    %c0_8 = arith.constant 0 : index
    %c0_9 = arith.constant 0 : index
    %c0_10 = arith.constant 0 : index
    %4 = vector.load %arg4[%c0_7, %c0_8, %c0_9, %c0_10] : memref<1x1x16x128xbf16, #tpu.memory_space<vmem>>, vector<1x1x16x128xbf16>
    %5 = vector.shape_cast %4 : vector<1x1x16x128xbf16> to vector<1x16x128xbf16>
    %6 = tpu.concatenate %1, %3, %5 in 0 : vector<1x16x128xbf16>, vector<8x16x128xbf16>, vector<1x16x128xbf16> -> vector<10x16x128xbf16>
    %7 = vector.shape_cast %6 : vector<10x16x128xbf16> to vector<160x128xbf16>
    %c0_11 = arith.constant 0 : index
    %c0_12 = arith.constant 0 : index
    %8 = vector.load %arg5[%c0_11, %c0_12] : memref<128x128xbf16, #tpu.memory_space<vmem>>, vector<128x128xbf16>
    %cst = arith.constant dense<0.000000e+00> : vector<160x128xf32>
    %9 = tpu.matmul %7, %8, %cst {dimension_numbers = #tpu.dot_dimension_numbers<[1], [0], [0], [1], [0, 0, 1, 1], [], []>} : vector<160x128xbf16>, vector<128x128xbf16>, vector<160x128xf32> -> vector<160x128xf32>
    %c0_13 = arith.constant 0 : index
    %c0_14 = arith.constant 0 : index
    %10 = vector.load %arg8[%c0_13, %c0_14] : memref<1x128xf32, #tpu.memory_space<vmem>>, vector<1x128xf32>
    %11 = vector.broadcast %10 : vector<1x128xf32> to vector<160x128xf32>
    %12 = arith.mulf %9, %11 : vector<160x128xf32>
    %c0_15 = arith.constant 0 : index
    %c0_16 = arith.constant 0 : index
    %13 = vector.load %arg9[%c0_15, %c0_16] : memref<1x128xf32, #tpu.memory_space<vmem>>, vector<1x128xf32>
    %14 = vector.broadcast %13 : vector<1x128xf32> to vector<160x128xf32>
    %15 = arith.addf %12, %14 : vector<160x128xf32>
    %cst_17 = arith.constant 0.000000e+00 : f32
    %16 = vector.broadcast %cst_17 : f32 to vector<160x128xf32>
    %17 = arith.maximumf %15, %16 : vector<160x128xf32>
    %18 = arith.truncf %17 : vector<160x128xf32> to vector<160x128xbf16>
    %19 = vector.shape_cast %18 : vector<160x128xbf16> to vector<10x16x128xbf16>
    %20 = tpu.iota {dimensions = array<i32: 0>} : vector<10x1x1xi32>
    %c0_i32 = arith.constant 0 : i32
    %21 = vector.broadcast %c0_i32 : i32 to vector<10x1x1xi32>
    %22 = arith.cmpi ne, %20, %21 : vector<10x1x1xi32>
    %c0_i32_18 = arith.constant 0 : i32
    %23 = arith.cmpi sgt, %arg1, %c0_i32_18 : i32
    %24 = vector.broadcast %23 : i1 to vector<10x1x1xi1>
    %25 = arith.ori %22, %24 : vector<10x1x1xi1>
    %c9_i32 = arith.constant 9 : i32
    %26 = vector.broadcast %c9_i32 : i32 to vector<10x1x1xi32>
    %27 = arith.cmpi ne, %20, %26 : vector<10x1x1xi32>
    %c1_i32 = arith.constant 1 : i32
    %28 = arith.cmpi slt, %arg1, %c1_i32 : i32
    %29 = vector.broadcast %28 : i1 to vector<10x1x1xi1>
    %30 = arith.ori %27, %29 : vector<10x1x1xi1>
    %31 = arith.andi %25, %30 : vector<10x1x1xi1>
    %cst_19 = arith.constant 0.000000e+00 : bf16
    %32 = vector.broadcast %cst_19 : bf16 to vector<10x16x128xbf16>
    %33 = vector.shape_cast %31 : vector<10x1x1xi1> to vector<10x1x1xi1>
    %34 = vector.broadcast %33 : vector<10x1x1xi1> to vector<10x16x128xi1>
    %35 = arith.select %34, %19, %32 : vector<10x16x128xi1>, vector<10x16x128xbf16>
    %cst_20 = arith.constant 0.000000e+00 : bf16
    %36 = vector.broadcast %cst_20 : bf16 to vector<10x1x128xbf16>
    %37 = tpu.concatenate %36, %35, %36 in 1 : vector<10x1x128xbf16>, vector<10x16x128xbf16>, vector<10x1x128xbf16> -> vector<10x18x128xbf16>
    %cst_21 = arith.constant 0.000000e+00 : f32
    %38 = vector.broadcast %cst_21 : f32 to vector<128x128xf32>
    %39 = vector.extract_strided_slice %37 {offsets = [0, 0, 0], sizes = [8, 18, 128], strides = [1, 1, 1]} : vector<10x18x128xbf16> to vector<8x18x128xbf16>
    %40 = vector.extract_strided_slice %39 {offsets = [0, 0, 0], sizes = [8, 16, 128], strides = [1, 1, 1]} : vector<8x18x128xbf16> to vector<8x16x128xbf16>
    %41 = vector.extract_strided_slice %39 {offsets = [0, 1, 0], sizes = [8, 16, 128], strides = [1, 1, 1]} : vector<8x18x128xbf16> to vector<8x16x128xbf16>
    %42 = vector.extract_strided_slice %39 {offsets = [0, 2, 0], sizes = [8, 16, 128], strides = [1, 1, 1]} : vector<8x18x128xbf16> to vector<8x16x128xbf16>
    %43 = tpu.concatenate %40, %41, %42 in 2 : vector<8x16x128xbf16>, vector<8x16x128xbf16>, vector<8x16x128xbf16> -> vector<8x16x384xbf16>
    %44 = vector.shape_cast %43 : vector<8x16x384xbf16> to vector<128x384xbf16>
    %c0_22 = arith.constant 0 : index
    %c0_23 = arith.constant 0 : index
    %c0_24 = arith.constant 0 : index
    %45 = vector.load %arg6[%c0_22, %c0_23, %c0_24] : memref<3x384x128xbf16, #tpu.memory_space<vmem>>, vector<1x384x128xbf16>
    %46 = vector.shape_cast %45 : vector<1x384x128xbf16> to vector<384x128xbf16>
    %cst_25 = arith.constant dense<0.000000e+00> : vector<128x128xf32>
    %47 = tpu.matmul %44, %46, %cst_25 {dimension_numbers = #tpu.dot_dimension_numbers<[1], [0], [0], [1], [0, 0, 1, 1], [], []>} : vector<128x384xbf16>, vector<384x128xbf16>, vector<128x128xf32> -> vector<128x128xf32>
    %48 = arith.addf %38, %47 : vector<128x128xf32>
    %49 = vector.extract_strided_slice %37 {offsets = [1, 0, 0], sizes = [8, 18, 128], strides = [1, 1, 1]} : vector<10x18x128xbf16> to vector<8x18x128xbf16>
    %50 = vector.extract_strided_slice %49 {offsets = [0, 0, 0], sizes = [8, 16, 128], strides = [1, 1, 1]} : vector<8x18x128xbf16> to vector<8x16x128xbf16>
    %51 = vector.extract_strided_slice %49 {offsets = [0, 1, 0], sizes = [8, 16, 128], strides = [1, 1, 1]} : vector<8x18x128xbf16> to vector<8x16x128xbf16>
    %52 = vector.extract_strided_slice %49 {offsets = [0, 2, 0], sizes = [8, 16, 128], strides = [1, 1, 1]} : vector<8x18x128xbf16> to vector<8x16x128xbf16>
    %53 = tpu.concatenate %50, %51, %52 in 2 : vector<8x16x128xbf16>, vector<8x16x128xbf16>, vector<8x16x128xbf16> -> vector<8x16x384xbf16>
    %54 = vector.shape_cast %53 : vector<8x16x384xbf16> to vector<128x384xbf16>
    %c1 = arith.constant 1 : index
    %c0_26 = arith.constant 0 : index
    %c0_27 = arith.constant 0 : index
    %55 = vector.load %arg6[%c1, %c0_26, %c0_27] : memref<3x384x128xbf16, #tpu.memory_space<vmem>>, vector<1x384x128xbf16>
    %56 = vector.shape_cast %55 : vector<1x384x128xbf16> to vector<384x128xbf16>
    %cst_28 = arith.constant dense<0.000000e+00> : vector<128x128xf32>
    %57 = tpu.matmul %54, %56, %cst_28 {dimension_numbers = #tpu.dot_dimension_numbers<[1], [0], [0], [1], [0, 0, 1, 1], [], []>} : vector<128x384xbf16>, vector<384x128xbf16>, vector<128x128xf32> -> vector<128x128xf32>
    %58 = arith.addf %48, %57 : vector<128x128xf32>
    %59 = vector.extract_strided_slice %37 {offsets = [2, 0, 0], sizes = [8, 18, 128], strides = [1, 1, 1]} : vector<10x18x128xbf16> to vector<8x18x128xbf16>
    %60 = vector.extract_strided_slice %59 {offsets = [0, 0, 0], sizes = [8, 16, 128], strides = [1, 1, 1]} : vector<8x18x128xbf16> to vector<8x16x128xbf16>
    %61 = vector.extract_strided_slice %59 {offsets = [0, 1, 0], sizes = [8, 16, 128], strides = [1, 1, 1]} : vector<8x18x128xbf16> to vector<8x16x128xbf16>
    %62 = vector.extract_strided_slice %59 {offsets = [0, 2, 0], sizes = [8, 16, 128], strides = [1, 1, 1]} : vector<8x18x128xbf16> to vector<8x16x128xbf16>
    %63 = tpu.concatenate %60, %61, %62 in 2 : vector<8x16x128xbf16>, vector<8x16x128xbf16>, vector<8x16x128xbf16> -> vector<8x16x384xbf16>
    %64 = vector.shape_cast %63 : vector<8x16x384xbf16> to vector<128x384xbf16>
    %c2 = arith.constant 2 : index
    %c0_29 = arith.constant 0 : index
    %c0_30 = arith.constant 0 : index
    %65 = vector.load %arg6[%c2, %c0_29, %c0_30] : memref<3x384x128xbf16, #tpu.memory_space<vmem>>, vector<1x384x128xbf16>
    %66 = vector.shape_cast %65 : vector<1x384x128xbf16> to vector<384x128xbf16>
    %cst_31 = arith.constant dense<0.000000e+00> : vector<128x128xf32>
    %67 = tpu.matmul %64, %66, %cst_31 {dimension_numbers = #tpu.dot_dimension_numbers<[1], [0], [0], [1], [0, 0, 1, 1], [], []>} : vector<128x384xbf16>, vector<384x128xbf16>, vector<128x128xf32> -> vector<128x128xf32>
    %68 = arith.addf %58, %67 : vector<128x128xf32>
    %c0_32 = arith.constant 0 : index
    %c0_33 = arith.constant 0 : index
    %69 = vector.load %arg10[%c0_32, %c0_33] : memref<1x128xf32, #tpu.memory_space<vmem>>, vector<1x128xf32>
    %70 = vector.broadcast %69 : vector<1x128xf32> to vector<128x128xf32>
    %71 = arith.mulf %68, %70 : vector<128x128xf32>
    %c0_34 = arith.constant 0 : index
    %c0_35 = arith.constant 0 : index
    %72 = vector.load %arg11[%c0_34, %c0_35] : memref<1x128xf32, #tpu.memory_space<vmem>>, vector<1x128xf32>
    %73 = vector.broadcast %72 : vector<1x128xf32> to vector<128x128xf32>
    %74 = arith.addf %71, %73 : vector<128x128xf32>
    %cst_36 = arith.constant 0.000000e+00 : f32
    %75 = vector.broadcast %cst_36 : f32 to vector<128x128xf32>
    %76 = arith.maximumf %74, %75 : vector<128x128xf32>
    %77 = arith.truncf %76 : vector<128x128xf32> to vector<128x128xbf16>
    %c0_37 = arith.constant 0 : index
    %c0_38 = arith.constant 0 : index
    %78 = vector.load %arg7[%c0_37, %c0_38] : memref<128x128xbf16, #tpu.memory_space<vmem>>, vector<128x128xbf16>
    %cst_39 = arith.constant dense<0.000000e+00> : vector<128x128xf32>
    %79 = tpu.matmul %77, %78, %cst_39 {dimension_numbers = #tpu.dot_dimension_numbers<[1], [0], [0], [1], [0, 0, 1, 1], [], []>} : vector<128x128xbf16>, vector<128x128xbf16>, vector<128x128xf32> -> vector<128x128xf32>
    %80 = vector.shape_cast %3 : vector<8x16x128xbf16> to vector<128x128xbf16>
    %81 = arith.extf %80 : vector<128x128xbf16> to vector<128x128xf32>
    %c0_40 = arith.constant 0 : index
    %c0_41 = arith.constant 0 : index
    %82 = vector.load %arg12[%c0_40, %c0_41] : memref<1x128xf32, #tpu.memory_space<vmem>>, vector<1x128xf32>
    %83 = vector.broadcast %82 : vector<1x128xf32> to vector<128x128xf32>
    %84 = arith.mulf %79, %83 : vector<128x128xf32>
    %c0_42 = arith.constant 0 : index
    %c0_43 = arith.constant 0 : index
    %85 = vector.load %arg13[%c0_42, %c0_43] : memref<1x128xf32, #tpu.memory_space<vmem>>, vector<1x128xf32>
    %86 = vector.broadcast %85 : vector<1x128xf32> to vector<128x128xf32>
    %87 = arith.addf %84, %86 : vector<128x128xf32>
    %88 = arith.addf %87, %81 : vector<128x128xf32>
    %cst_44 = arith.constant 0.000000e+00 : f32
    %89 = vector.broadcast %cst_44 : f32 to vector<128x128xf32>
    %90 = arith.maximumf %88, %89 : vector<128x128xf32>
    %91 = vector.shape_cast %90 : vector<128x128xf32> to vector<8x16x128xf32>
    %c0_45 = arith.constant 0 : index
    %c0_46 = arith.constant 0 : index
    %c0_47 = arith.constant 0 : index
    %c0_48 = arith.constant 0 : index
    %92 = vector.load %arg14[%c0_45, %c0_46, %c0_47, %c0_48] : memref<1x8x16x128xf32, #tpu.memory_space<vmem>>, vector<1x8x16x128xf32>
    %93 = vector.shape_cast %92 : vector<1x8x16x128xf32> to vector<8x16x128xf32>
    %94 = vector.shape_cast %91 : vector<8x16x128xf32> to vector<1x8x16x128xf32>
    tpu.vector_store %arg14[%c0_45, %c0_46, %c0_47, %c0_48], %94 {strides = array<i32>} : memref<1x8x16x128xf32, #tpu.memory_space<vmem>>, vector<1x8x16x128xf32>,
    return
  }
  func.func @transform_0(%arg0: i32, %arg1: i32) -> (i32, i32, i32, i32) {
    %c8_i32 = arith.constant 8 : i32
    %0 = arith.muli %arg1, %c8_i32 : i32
    %c1_i32 = arith.constant 1 : i32
    %1 = arith.subi %0, %c1_i32 : i32
    %c0_i32 = arith.constant 0 : i32
    %2 = arith.maxsi %1, %c0_i32 : i32
    %c0_i32_0 = arith.constant 0 : i32
    %c0_i32_1 = arith.constant 0 : i32
    %c0_i32_2 = arith.constant 0 : i32
    return %arg0, %2, %c0_i32_0, %c0_i32_1 : i32, i32, i32, i32
  }
  func.func @transform_1(%arg0: i32, %arg1: i32) -> (i32, i32, i32, i32) {
    %c0_i32 = arith.constant 0 : i32
    %c0_i32_0 = arith.constant 0 : i32
    %c0_i32_1 = arith.constant 0 : i32
    return %arg0, %arg1, %c0_i32, %c0_i32_0 : i32, i32, i32, i32
  }
  func.func @transform_2(%arg0: i32, %arg1: i32) -> (i32, i32, i32, i32) {
    %c8_i32 = arith.constant 8 : i32
    %0 = arith.muli %arg1, %c8_i32 : i32
    %c8_i32_0 = arith.constant 8 : i32
    %1 = arith.addi %0, %c8_i32_0 : i32
    %c15_i32 = arith.constant 15 : i32
    %2 = arith.minsi %1, %c15_i32 : i32
    %c0_i32 = arith.constant 0 : i32
    %c0_i32_1 = arith.constant 0 : i32
    %c0_i32_2 = arith.constant 0 : i32
    return %arg0, %2, %c0_i32, %c0_i32_1 : i32, i32, i32, i32
  }
  func.func @transform_3(%arg0: i32, %arg1: i32) -> (i32, i32) {
    %c0_i32 = arith.constant 0 : i32
    %c0_i32_0 = arith.constant 0 : i32
    %c0_i32_1 = arith.constant 0 : i32
    return %c0_i32, %c0_i32_0 : i32, i32
  }
  func.func @transform_4(%arg0: i32, %arg1: i32) -> (i32, i32, i32) {
    %c0_i32 = arith.constant 0 : i32
    %c0_i32_0 = arith.constant 0 : i32
    %c0_i32_1 = arith.constant 0 : i32
    %c0_i32_2 = arith.constant 0 : i32
    return %c0_i32, %c0_i32_0, %c0_i32_1 : i32, i32, i32
  }
  func.func @transform_5(%arg0: i32, %arg1: i32) -> (i32, i32) {
    %c0_i32 = arith.constant 0 : i32
    %c0_i32_0 = arith.constant 0 : i32
    %c0_i32_1 = arith.constant 0 : i32
    return %c0_i32, %c0_i32_0 : i32, i32
  }
  func.func @transform_6(%arg0: i32, %arg1: i32) -> (i32, i32) {
    %c0_i32 = arith.constant 0 : i32
    %c0_i32_0 = arith.constant 0 : i32
    %c0_i32_1 = arith.constant 0 : i32
    return %c0_i32, %c0_i32_0 : i32, i32
  }
  func.func @transform_7(%arg0: i32, %arg1: i32) -> (i32, i32) {
    %c0_i32 = arith.constant 0 : i32
    %c0_i32_0 = arith.constant 0 : i32
    %c0_i32_1 = arith.constant 0 : i32
    return %c0_i32, %c0_i32_0 : i32, i32
  }
  func.func @transform_8(%arg0: i32, %arg1: i32) -> (i32, i32) {
    %c0_i32 = arith.constant 0 : i32
    %c0_i32_0 = arith.constant 0 : i32
    %c0_i32_1 = arith.constant 0 : i32
    return %c0_i32, %c0_i32_0 : i32, i32
  }
  func.func @transform_9(%arg0: i32, %arg1: i32) -> (i32, i32) {
    %c0_i32 = arith.constant 0 : i32
    %c0_i32_0 = arith.constant 0 : i32
    %c0_i32_1 = arith.constant 0 : i32
    return %c0_i32, %c0_i32_0 : i32, i32
  }
  func.func @transform_10(%arg0: i32, %arg1: i32) -> (i32, i32) {
    %c0_i32 = arith.constant 0 : i32
    %c0_i32_0 = arith.constant 0 : i32
    %c0_i32_1 = arith.constant 0 : i32
    return %c0_i32, %c0_i32_0 : i32, i32
  }
  func.func @transform_11(%arg0: i32, %arg1: i32) -> (i32, i32) {
    %c0_i32 = arith.constant 0 : i32
    %c0_i32_0 = arith.constant 0 : i32
    %c0_i32_1 = arith.constant 0 : i32
    return %c0_i32, %c0_i32_0 : i32, i32
  }
  func.func @transform_12(%arg0: i32, %arg1: i32) -> (i32, i32, i32, i32) {
    %c0_i32 = arith.constant 0 : i32
    %c0_i32_0 = arith.constant 0 : i32
    %c0_i32_1 = arith.constant 0 : i32
    return %arg0, %arg1, %c0_i32, %c0_i32_0 : i32, i32, i32, i32
  }
}

</mosaic_0001>

<bundles_post_ra>
// kernel: bottleneck_forward.1
= control target key start
LH: loop header
LB: loop body
LE: loop exit
PB: predicated region body
PF: predicated region fallthrough
CT: control target
= control target key end

     0   :  { %s3519_s21 = smov 0   ;;  %s3521_s22 = smov 0   ;;  %s4449_s0 = inlined_call_operand.vmem [shape: bf16[2,16,16,128], index: 0, kind: input, shape index: {}, may-alias: {0,1,2}]   ;;  %s4450_s1 = inlined_call_operand.vmem [shape: bf16[2,16,16,128], index: 1, kind: input, shape index: {}, may-alias: {0,1,2}]   ;;  %s4451_s2 = inlined_call_operand.vmem [shape: bf16[2,16,16,128], index: 2, kind: input, shape index: {}, may-alias: {0,1,2}]   ;;  %s4452_s3 = inlined_call_operand.vmem [shape: bf16[128,128], index: 3, kind: input, shape index: {}]   ;;  %s4453_s4 = inlined_call_operand.vmem [shape: bf16[3,384,128], index: 4, kind: input, shape index: {}]   ;;  %s4454_s5 = inlined_call_operand.vmem [shape: bf16[128,128], index: 5, kind: input, shape index: {}]   ;;  %s4455_s6 = inlined_call_operand.vmem [shape: f32[1,128], index: 6, kind: input, shape index: {}]   ;;  %s4456_s7 = inlined_call_operand.vmem [shape: f32[1,128], index: 7, kind: input, shape index: {}]   ;;  %s4457_s8 = inlined_call_operand.vmem [shape: f32[1,128], index: 8, kind: input, shape index: {}]   ;;  %s4458_s9 = inlined_call_operand.vmem [shape: f32[1,128], index: 9, kind: input, shape index: {}]   ;;  %s4459_s10 = inlined_call_operand.vmem [shape: f32[1,128], index: 10, kind: input, shape index: {}]   ;;  %s4460_s11 = inlined_call_operand.vmem [shape: f32[1,128], index: 11, kind: input, shape index: {}]   ;;  %s4461_s12 = inlined_call_operand.vmem [shape: f32[2,16,16,128], index: 12, kind: output, shape index: {}]  }
   0x1   :  { %4462 = sst [smem:[#allocation8_spill]] %s4449_s0  ;;  %s3523_s23 = smov 0  }
   0x2   :  { %s3525_s24 = smov 0   ;;  %s3527_s25 = smov 0  }
   0x3 LB: > { %s31_s26 = sadd.s32 1, %s3444_s23  ;;  %s34_s27 = sadd.s32 1, %s3448_s24  ;;  %s3452_s25 = sphi %s3527_s25, %s22_s25   ;;  %s3448_s24 = sphi %s3525_s24, %s4486_s24   ;;  %s3444_s23 = sphi %s3523_s23, %s4485_s23   ;;  %s3440_s22 = sphi %s3521_s22, %s4484_s22   ;;  %s3436_s21 = sphi %s3519_s21, %s4483_s21  }
   0x4   : > { %p32_p0 = scmp.ge.s32.totalorder %s31_s26, 2  ;;  %p2728_p1 = scmp.ge.s32.totalorder %s3452_s25, 1 }
   0x5   : > { %p448_p2 = scmp.lt.s32.totalorder %s3452_s25, 5 }
   0x6   : > { %s4488_s26 = smov (%p32_p0, %s31_s26), 0  ;;  %s4490_s27 = smov (!%p32_p0, %s34_s27), %s3448_s24 }
   0x7   : > { %4463 = sst [smem:[#allocation2_spill]] %s4488_s26  ;;  %p449_p3 = pnand %p2728_p1, %p448_p2 }
   0x8   : > { %p36_p4 = scmp.ge.s32.totalorder %s4490_s27, 2 }
   0x9   : > { %452 = sbr.rel (%p449_p3) target bundleno = 875 (0x36b), region = 68 }
   0xa   : > { %s4492_s27 = smov (%p36_p4, %s4490_s27), 0 }
   0xb   : > { %4464 = sst [smem:[#allocation3_spill]] %s4492_s27 }
   0xe   : > { %v3263_v0 = vld [vmem:[%s4452_s3 + $0x38] sm:$0xff]  ;;  %s3555_s30 = sshll.u32 %s3436_s21, 3  ;;  %v3262_v1 = vld [vmem:[%s4452_s3 + $0x30] sm:$0xff]  ;;  %v3261_v2 = vld [vmem:[%s4452_s3 + $0x28] sm:$0xff]  ;;  %p530_p6 = scmp.lt.s32.totalorder %s3440_s22, 1  ;;  %vm1046_vm0 = vcmask 1040384  }
   0xf   : > { %727 = vmatpush.bf16.msra.mxu0 %v3263_v0  ;;  %s2730_s15 = sadd.s32 4294967295, %s3555_s30  ;;  %v3260_v3 = vld [vmem:[%s4452_s3 + $0x20] sm:$0xff]  ;;  %v3259_v4 = vld [vmem:[%s4452_s3 + $0x18] sm:$0xff]  ;;  %v3258_v5 = vld [vmem:[%s4452_s3 + $0x10] sm:$0xff]  ;;  %p546_p8 = scmp.lt.s32.totalorder %s3555_s30, 15  ;;  %vm1190_vm3 = vcmask 1046528  }
  0x10   : > { %p528_p5 = scmp.gt.s32.totalorder %s2730_s15, 0  ;;  %p2731_p7 = scmp.lt.s32.totalorder %s2730_s15, 15  ;;  %v3257_v6 = vld [vmem:[%s4452_s3 + $0x8] sm:$0xff]  ;;  %v3256_v7 = vld [vmem:[%s4452_s3] sm:$0xff]  ;;  %v3295_v15 = vld [vmem:[%s4453_s4 + $0xf8] sm:$0xff] }
  0x11   : > { %s4496_s22 = smov (!%p530_p6, %s3440_s22), 1  ;;  %s4465_s0 = sld [smem:[#allocation8_spill]]  ;;  %1483 = vmatpush.bf16.msra.mxu1 %v3295_v15  ;;  %v3311_v16 = vld [vmem:[%s4453_s4 + $0x178] sm:$0xff]  ;;  %v3294_v18 = vld [vmem:[%s4453_s4 + $0xf0] sm:$0xff]  ;;  %v3293_v21 = vld [vmem:[%s4453_s4 + $0xe8] sm:$0xff] }
  0x12   : > { %s4494_s15 = smov (!%p528_p5, %s2730_s15), 0  ;;  %s3570_s13 = sshll.u32 %s4496_s22, 5  ;;  %1581 = vmatpush.bf16.msra.mxu3 %v3311_v16  ;;  %v3303_v19 = vld [vmem:[%s4453_s4 + $0x138] sm:$0xff]  ;;  %v3310_v20 = vld [vmem:[%s4453_s4 + $0x170] sm:$0xff]  ;;  %v3309_v23 = vld [vmem:[%s4453_s4 + $0x168] sm:$0xff] }
  0x13   : > { %728 = vmatpush.bf16.msra.mxu0 %v3262_v1  ;;  %s4498_s15 = smov (!%p2731_p7, %s4494_s15), 15  ;;  %1532 = vmatpush.bf16.msra.mxu2 %v3303_v19  ;;  %v3302_v22 = vld [vmem:[%s4453_s4 + $0x130] sm:$0xff]  ;;  %v3292_v24 = vld [vmem:[%s4453_s4 + $0xe0] sm:$0xff]  ;;  %v3301_v25 = vld [vmem:[%s4453_s4 + $0x128] sm:$0xff]  ;;  %vm1047_vm1 = vsmask.f32 256 }
  0x14   : > { %s2736_s29 = sshll.u32 %s4498_s15, 1  ;;  %v3308_v26 = vld [vmem:[%s4453_s4 + $0x160] sm:$0xff]  ;;  %v3291_v27 = vld [vmem:[%s4453_s4 + $0xd8] sm:$0xff]  ;;  %v3290_v32 = vld [vmem:[%s4453_s4 + $0xd0] sm:$0xff]  ;;  %vm1069_vm4 = vsmask.f32 7424 }
  0x15   : > { %s536_s17 = sadd.s32 %s3570_s13, %s2736_s29  ;;  %1484 = vmatpush.bf16.msra.mxu1 %v3294_v18  ;;  %v3319_v28 = vld [vmem:[%s4453_s4 + $0x1b8] sm:$0xff]  ;;  %v3300_v29 = vld [vmem:[%s4453_s4 + $0x120] sm:$0xff]  ;;  %v3318_v33 = vld [vmem:[%s4453_s4 + $0x1b0] sm:$0xff]  ;;  %p874_p10 = scmp.gt.s32.totalorder %s3436_s21, 0 }
  0x16   : > { %s2738_s27 = sshll.u32 %s536_s17, 2  ;;  %s555_s17 = sadd.s32 8, %s3555_s30  ;;  %1582 = vmatpush.bf16.msra.mxu3 %v3310_v20  ;;  %v3307_v30 = vld [vmem:[%s4453_s4 + $0x158] sm:$0xff]  ;;  %v3306_v36 = vld [vmem:[%s4453_s4 + $0x150] sm:$0xff]  ;;  %v3289_v37 = vld [vmem:[%s4453_s4 + $0xc8] sm:$0xff] }
  0x17   : > { %729 = vmatpush.bf16.msra.mxu0 %v3261_v2  ;;  %s538_s14 = scalar_lea.vmem %s4465_s0, %s2738_s27  ;;  %p556_p9 = scmp.lt.s32.totalorder %s555_s17, 15  ;;  %1533 = vmatpush.bf16.msra.mxu2 %v3302_v22  ;;  %v3299_v35 = vld [vmem:[%s4453_s4 + $0x118] sm:$0xff]  ;;  %v3317_v38 = vld [vmem:[%s4453_s4 + $0x1a8] sm:$0xff]  ;;  %v3298_v39 = vld [vmem:[%s4453_s4 + $0x110] sm:$0xff] }
  0x18   : > { %s547_s16 = scalar_select %p546_p8, %s3555_s30, 15  ;;  %v3246_v8 = vld [vmem:[%s538_s14] sm:$0xff]  ;;  %v3305_v40 = vld [vmem:[%s4453_s4 + $0x148] sm:$0xff]  ;;  %v3315_v46 = vld [vmem:[%s4453_s4 + $0x198] sm:$0xff] }
  0x19   : > { %s4500_s17 = smov (!%p556_p9, %s555_s17), 15  ;;  %1485 = vmatpush.bf16.msra.mxu1 %v3293_v21  ;;  %v3288_v41 = vld [vmem:[%s4453_s4 + $0xc0] sm:$0xff]  ;;  %v3297_v44 = vld [vmem:[%s4453_s4 + $0x108] sm:$0xff]  ;;  %v3314_v50 = vld [vmem:[%s4453_s4 + $0x190] sm:$0xff]  ;;  %p878_p11 = scmp.lt.s32.totalorder %s3436_s21, 1 }
  0x1a   : > { %s2740_s29 = sshll.u32 %s547_s16, 1  ;;  %s4502_s17 = smov (!%p556_p9, %s4500_s17), 15  ;;  %1583 = vmatpush.bf16.msra.mxu3 %v3309_v23  ;;  %v3316_v42 = vld [vmem:[%s4453_s4 + $0x1a0] sm:$0xff]  ;;  %v3313_v54 = vld [vmem:[%s4453_s4 + $0x188] sm:$0xff]  ;;  %v3279_v60 = vld [vmem:[%s4453_s4 + $0x78] sm:$0xff] }
  0x1b   : > { %730 = vmatpush.bf16.msra.mxu0 %v3260_v3  ;;  %s3588_s26 = sadd.s32 %s2740_s29, %s3570_s13  ;;  %s3597_s27 = sshll.u32 %s4502_s17, 1  ;;  %1534 = vmatpush.bf16.msra.mxu2 %v3301_v25  ;;  %v3304_v45 = vld [vmem:[%s4453_s4 + $0x140] sm:$0xff]  ;;  %v3271_v61 = vld [vmem:[%s4453_s4 + $0x38] sm:$0xff]  ;;  %vm3737_vm2 = vmand %vm1046_vm0, %vm1047_vm1 }
  0x1c   : > { %s2742_s18 = sshll.u32 %s3588_s26, 2  ;;  %s4466_s30 = sadd.s32 %s3597_s27, %s3570_s13  ;;  %v3296_v47 = vld [vmem:[%s4453_s4 + $0x100] sm:$0xff]  ;;  %v3270_v18 = vld [vmem:[%s4453_s4 + $0x30] sm:$0xff] }
  0x1d   : > { %s3595_s22 = scalar_lea.vmem %s4450_s1, %s2742_s18  ;;  %1486 = vmatpush.bf16.msra.mxu1 %v3292_v24  ;;  %s2749_s28 = sshll.u32 %s4466_s30, 2  ;;  %v3709_v48 = vld [vmem:[%s4455_s6] ss:$0 sm:$0xff] }
  0x1e   : > { %v3247_v9 = vld [vmem:[%s3595_s22] sm:$0xff]  ;;  %v3248_v10 = vld [vmem:[%s3595_s22 + $0x8] sm:$0xff]  ;;  %v3249_v11 = vld [vmem:[%s3595_s22 + $0x10] sm:$0xff]  ;;  %1584 = vmatpush.bf16.msra.mxu3 %v3308_v26  ;;  %s566_s0 = scalar_lea.vmem %s4451_s2, %s2749_s28  ;;  %s2753_s19 = sshll.u32 %s3588_s26, 3 }
  0x1f   : > { %731 = vmatpush.bf16.msra.mxu0 %v3259_v4  ;;  %v3250_v12 = vld [vmem:[%s3595_s22 + $0x18] sm:$0xff]  ;;  %v3251_v13 = vld [vmem:[%s3595_s22 + $0x20] sm:$0xff]  ;;  %v3252_v14 = vld [vmem:[%s3595_s22 + $0x28] sm:$0xff]  ;;  %1535 = vmatpush.bf16.msra.mxu2 %v3300_v29  ;;  %s879_s14 = scalar_select %p878_p11, 1, 0 }
  0x20   : > { %v3253_v17 = vld [vmem:[%s3595_s22 + $0x30] sm:$0xff]  ;;  %v3254_v31 = vld [vmem:[%s3595_s22 + $0x38] sm:$0xff]  ;;  %v3255_v49 = vld [vmem:[%s566_s0] sm:$0xff]  ;;  %s875_s0 = scalar_select %p874_p10, 1, 0 }
  0x21   : > { %1487 = vmatpush.bf16.msra.mxu1 %v3291_v27  ;;  %v3718_v53 = vld [vmem:[%s4456_s7] ss:$0 sm:$0xff]  ;;  %s4344_s27 = scalar_lea.vmem %s4461_s12, %s2753_s19 }
  0x22   : > { %1585 = vmatpush.bf16.msra.mxu3 %v3307_v30  ;;  %v3312_v56 = vld [vmem:[%s4453_s4 + $0x180] sm:$0xff] }
  0x23   : > { %732 = vmatpush.bf16.msra.mxu0 %v3258_v5  ;;  %1536 = vmatpush.bf16.msra.mxu2 %v3299_v35 }
  0x25   : > { %1488 = vmatpush.bf16.msra.mxu1 %v3290_v32 }
  0x26   : > { %1586 = vmatpush.bf16.msra.mxu3 %v3306_v36 }
  0x27   : > { %733 = vmatpush.bf16.msra.mxu0 %v3257_v6  ;;  %1537 = vmatpush.bf16.msra.mxu2 %v3298_v39 }
  0x29   : > { %1489 = vmatpush.bf16.msra.mxu1 %v3289_v37 }
  0x2a   : > { %1587 = vmatpush.bf16.msra.mxu3 %v3305_v40 }
  0x2b   : > { %734 = vmatpush.bf16.msra.mxu0 %v3256_v7  ;;  %1538 = vmatpush.bf16.msra.mxu2 %v3297_v44 }
  0x2d   : > { %1490 = vmatpush.bf16.msra.mxu1 %v3288_v41 }
  0x2e   : > { %735 = vmatmul.bf16.vlgmr.msra.gmra.mxu0 %v3246_v8  ;;  %1588 = vmatpush.bf16.msra.mxu3 %v3304_v45 }
  0x2f   : > { %2133 = vmatpush.bf16.msrb.mxu0 %v3319_v28  ;;  %1539 = vmatpush.bf16.msra.mxu2 %v3296_v47 }
  0x31   : > { %1774 = vmatpush.bf16.msrb.mxu1 %v3271_v61 }
  0x33   : > { %2134 = vmatpush.bf16.msrb.mxu0 %v3318_v33  ;;  %1823 = vmatpush.bf16.msrb.mxu2 %v3279_v60 }
  0x35   : > { %1775 = vmatpush.bf16.msrb.mxu1 %v3270_v18 }
  0x37   : > { %2135 = vmatpush.bf16.msrb.mxu0 %v3317_v38 }
  0x3b   : > { %2136 = vmatpush.bf16.msrb.mxu0 %v3316_v42 }
  0x3e   : > { %740 = vmatmul.bf16.gmra.mxu0 %v3247_v9 }
  0x3f   : > { %2137 = vmatpush.bf16.msrb.mxu0 %v3315_v46 }
  0x43   : > { %2138 = vmatpush.bf16.msrb.mxu0 %v3314_v50 }
  0x47   : > { %2139 = vmatpush.bf16.msrb.mxu0 %v3313_v54 }
  0x4b   : > { %2140 = vmatpush.bf16.msrb.mxu0 %v3312_v56 }
  0x4e   : > { %745 = vmatmul.bf16.gmra.mxu0 %v3248_v10 }
  0x5e   : > { %750 = vmatmul.bf16.gmra.mxu0 %v3249_v11 }
  0x6e   : > { %755 = vmatmul.bf16.gmra.mxu0 %v3250_v12 }
  0x7e   : > { %760 = vmatmul.bf16.gmra.mxu0 %v3251_v13 }
  0x8e   : > { %765 = vmatmul.bf16.gmra.mxu0 %v3252_v14 }
  0x9e   : > { %770 = vmatmul.bf16.gmra.mxu0 %v3253_v17  ;;  %v3278_v17 = vld [vmem:[%s4453_s4 + $0x70] sm:$0xff] }
  0x9f   : > { %1824 = vmatpush.bf16.msrb.mxu2 %v3278_v17 }
  0xab   : > { %v3660_v34 = vpop.f32.mrf.mxu0 }
  0xae   : > { %775 = vmatmul.bf16.gmra.mxu0 %v3254_v31 }
  0xb3   : > { %v3686_v43 = vpop.f32.mrf.mxu0 }
  0xbb   : > { %v741_v51 = vpop.f32.mrf.mxu0 }
  0xbc   : > { %v792_v52 = vmul.f32 %v3709_v48, %v741_v51  ;;  %v3277_v51 = vld [vmem:[%s4453_s4 + $0x68] sm:$0xff] }
  0xbd   : > { %1825 = vmatpush.bf16.msrb.mxu2 %v3277_v51 }
  0xbe   : > { %780 = vmatmul.bf16.gmra.mxu0 %v3255_v49  ;;  %v816_v55 = vadd.f32 %v3718_v53, %v792_v52  ;;  %v3269_v52 = vld [vmem:[%s4453_s4 + $0x28] sm:$0xff] }
  0xbf   : > { %1776 = vmatpush.bf16.msrb.mxu1 %v3269_v52 }
  0xc0   : > { %v836_v58 = vmax.f32 %v816_v55, 0.0 }
  0xc2   : > { %v856_v63 = vpack.c.bf16 %v836_v58, %v836_v58 }
  0xc3   : > { %v743_v57 = vpop.f32.mrf.mxu0 }
  0xc4   : > { %v793_v59 = vmul.f32 %v3709_v48, %v743_v57  ;;  %v928_v3 = vunpack.c.l.b16 %v856_v63 }
  0xc6   : > { %v817_v62 = vadd.f32 %v3718_v53, %v793_v59 }
  0xc8   : > { %v837_v0 = vmax.f32 %v817_v62, 0.0 }
  0xca   : > { %v857_v1 = vpack.c.bf16 %v837_v0, %v837_v0 }
  0xcb   : > { %v746_v2 = vpop.f32.mrf.mxu0 }
  0xcc   : > { %v929_v4 = vunpack.c.l.b16 %v857_v1  ;;  %v794_v5 = vmul.f32 %v3709_v48, %v746_v2 }
  0xce   : > { %v947_v6 = vpack.c.b16 %v929_v4, %v928_v3  ;;  %v818_v8 = vadd.f32 %v3718_v53, %v794_v5 }
  0xd0   : > { %v964_v7 = vshrl.u32 %v947_v6, 16  ;;  %v967_v9 = vshll.u32 %v947_v6, 16  ;;  %v838_v13 = vmax.f32 %v818_v8, 0.0 }
  0xd2   : > { %v966_v10 = vrot.slane %v964_v7, 7  ;;  %v858_v25 = vpack.c.bf16 %v838_v13, %v838_v13 }
  0xd3   : > { %v748_v11 = vpop.f32.mrf.mxu0 }
  0xd4   : > { %v795_v14 = vmul.f32 %v3709_v48, %v748_v11  ;;  %v969_v15 = vor.u32 %v967_v9, %v966_v10  ;;  %v1060_v16 = vsel %vm3737_vm2, %v966_v10, 0  ;;  %v930_v35 = vunpack.c.l.b16 %v858_v25 }
  0xd5   : > { %v1195_v22 = vrot.slane %v1060_v16, 1  ;;  %v1090_v24 = vshll.u32 %v1060_v16, 16 }
  0xd6   : > { %v819_v19 = vadd.f32 %v3718_v53, %v795_v14  ;;  %v3753_v20 = vsel %vm3737_vm2, 0, %v969_v15 }
  0xd7   : > { %1491 = vmatmul.bf16.vlgmr.msra.gmra.mxu1 %v3753_v20  ;;  %v1194_v21 = vrot.slane %v3753_v20, 1  ;;  %v1085_v23 = vshll.u32 %v3753_v20, 16  ;;  %v1083_v28 = vshrl.u32 %v3753_v20, 16  ;;  %v1092_v33 = vrot.slane %v1090_v24, 1 }
  0xd8   : > { %v839_v26 = vmax.f32 %v819_v19, 0.0 }
  0xd9   : > { %v3759_v27 = vsel %vm1190_vm3, %v1194_v21, %v1195_v22  ;;  %v1087_v29 = vrot.slane %v1085_v23, 1  ;;  %v3276_v21 = vld [vmem:[%s4453_s4 + $0x60] sm:$0xff] }
  0xda   : > { %v859_v30 = vpack.c.bf16 %v839_v26, %v839_v26  ;;  %1589 = vmatmul.bf16.vlgmr.msra.gmra.mxu3 %v3759_v27  ;;  %v3268_v22 = vld [vmem:[%s4453_s4 + $0x20] sm:$0xff]  ;;  %1826 = vmatpush.bf16.msrb.mxu2 %v3276_v21 }
  0xdb   : > { %v751_v31 = vpop.f32.mrf.mxu0  ;;  %v1088_v32 = vor.u32 %v1087_v29, %v1083_v28  ;;  %1777 = vmatpush.bf16.msrb.mxu1 %v3268_v22 }
  0xdc   : > { %v931_v36 = vunpack.c.l.b16 %v859_v30  ;;  %v796_v37 = vmul.f32 %v3709_v48, %v751_v31 }
  0xdd   : > { %v3765_v38 = vsel %vm1069_vm4, %v1088_v32, %v1092_v33 }
  0xde   : > { %v948_v39 = vpack.c.b16 %v931_v36, %v930_v35  ;;  %1540 = vmatmul.bf16.vlgmr.msra.gmra.mxu2 %v3765_v38  ;;  %v820_v41 = vadd.f32 %v3718_v53, %v796_v37 }
  0xe0   : > { %v971_v40 = vshrl.u32 %v948_v39, 16  ;;  %v974_v44 = vshll.u32 %v948_v39, 16  ;;  %v840_v46 = vmax.f32 %v820_v41, 0.0 }
  0xe2   : > { %v973_v42 = vrot.slane %v971_v40, 7  ;;  %v860_v60 = vpack.c.bf16 %v840_v46, %v840_v46 }
  0xe3   : > { %v753_v45 = vpop.f32.mrf.mxu0 }
  0xe4   : > { %v797_v47 = vmul.f32 %v3709_v48, %v753_v45  ;;  %v976_v49 = vor.u32 %v974_v44, %v973_v42  ;;  %v1061_v50 = vsel %vm3737_vm2, %v973_v42, 0  ;;  %v932_v5 = vunpack.c.l.b16 %v860_v60  ;;  %v3267_v60 = vld [vmem:[%s4453_s4 + $0x18] sm:$0xff] }
  0xe5   : > { %v1198_v57 = vrot.slane %v1061_v50, 1  ;;  %v1102_v59 = vshll.u32 %v1061_v50, 16  ;;  %1778 = vmatpush.bf16.msrb.mxu1 %v3267_v60 }
  0xe6   : > { %v821_v54 = vadd.f32 %v3718_v53, %v797_v47  ;;  %v3781_v55 = vsel %vm3737_vm2, 0, %v976_v49 }
  0xe7   : > { %1496 = vmatmul.bf16.gmra.mxu1 %v3781_v55  ;;  %2141 = vmatmul.bf16.vlgmr.msrb.gmra.mxu0 %v3781_v55  ;;  %v1197_v56 = vrot.slane %v3781_v55, 1  ;;  %v1097_v58 = vshll.u32 %v3781_v55, 16  ;;  %v1095_v63 = vshrl.u32 %v3781_v55, 16  ;;  %v1104_v4 = vrot.slane %v1102_v59, 1  ;;  %v3275_v59 = vld [vmem:[%s4453_s4 + $0x58] sm:$0xff] }
  0xe8   : > { %v841_v61 = vmax.f32 %v821_v54, 0.0  ;;  %1827 = vmatpush.bf16.msrb.mxu2 %v3275_v59 }
  0xe9   : > { %v3788_v62 = vsel %vm1190_vm3, %v1197_v56, %v1198_v57  ;;  %v1099_v0 = vrot.slane %v1097_v58, 1 }
  0xea   : > { %v861_v1 = vpack.c.bf16 %v841_v61, %v841_v61  ;;  %1594 = vmatmul.bf16.gmra.mxu3 %v3788_v62 }
  0xeb   : > { %v756_v2 = vpop.f32.mrf.mxu0  ;;  %v1100_v3 = vor.u32 %v1099_v0, %v1095_v63 }
  0xec   : > { %v933_v6 = vunpack.c.l.b16 %v861_v1  ;;  %v798_v7 = vmul.f32 %v3709_v48, %v756_v2 }
  0xed   : > { %v3794_v8 = vsel %vm1069_vm4, %v1100_v3, %v1104_v4 }
  0xee   : > { %v949_v9 = vpack.c.b16 %v933_v6, %v932_v5  ;;  %1545 = vmatmul.bf16.gmra.mxu2 %v3794_v8  ;;  %v822_v11 = vadd.f32 %v3718_v53, %v798_v7 }
  0xf0   : > { %v978_v10 = vshrl.u32 %v949_v9, 16  ;;  %v981_v14 = vshll.u32 %v949_v9, 16  ;;  %v842_v16 = vmax.f32 %v822_v11, 0.0 }
  0xf2   : > { %v980_v13 = vrot.slane %v978_v10, 7  ;;  %v862_v30 = vpack.c.bf16 %v842_v16, %v842_v16 }
  0xf3   : > { %v758_v15 = vpop.f32.mrf.mxu0 }
  0xf4   : > { %v799_v17 = vmul.f32 %v3709_v48, %v758_v15  ;;  %v983_v18 = vor.u32 %v981_v14, %v980_v13  ;;  %v1062_v19 = vsel %vm3737_vm2, %v980_v13, 0  ;;  %v934_v41 = vunpack.c.l.b16 %v862_v30 }
  0xf5   : > { %v1201_v26 = vrot.slane %v1062_v19, 1  ;;  %v1114_v29 = vshll.u32 %v1062_v19, 16 }
  0xf6   : > { %v823_v23 = vadd.f32 %v3718_v53, %v799_v17  ;;  %v3810_v24 = vsel %vm3737_vm2, 0, %v983_v18 }
  0xf7   : > { %1501 = vmatmul.bf16.gmra.mxu1 %v3810_v24  ;;  %2146 = vmatmul.bf16.gmra.mxu0 %v3810_v24  ;;  %v1200_v25 = vrot.slane %v3810_v24, 1  ;;  %v1109_v28 = vshll.u32 %v3810_v24, 16  ;;  %v1107_v33 = vshrl.u32 %v3810_v24, 16  ;;  %v1116_v40 = vrot.slane %v1114_v29, 1 }
  0xf8   : > { %v843_v31 = vmax.f32 %v823_v23, 0.0 }
  0xf9   : > { %v3817_v32 = vsel %vm1190_vm3, %v1200_v25, %v1201_v26  ;;  %v1111_v35 = vrot.slane %v1109_v28, 1 }
  0xfa   : > { %v863_v36 = vpack.c.bf16 %v843_v31, %v843_v31  ;;  %1599 = vmatmul.bf16.gmra.mxu3 %v3817_v32 }
  0xfb   : > { %v761_v37 = vpop.f32.mrf.mxu0  ;;  %v1112_v39 = vor.u32 %v1111_v35, %v1107_v33  ;;  %v3274_v33 = vld [vmem:[%s4453_s4 + $0x50] sm:$0xff] }
  0xfc   : > { %v935_v42 = vunpack.c.l.b16 %v863_v36  ;;  %v800_v44 = vmul.f32 %v3709_v48, %v761_v37  ;;  %v3266_v35 = vld [vmem:[%s4453_s4 + $0x10] sm:$0xff]  ;;  %1828 = vmatpush.bf16.msrb.mxu2 %v3274_v33 }
  0xfd   : > { %v3823_v45 = vsel %vm1069_vm4, %v1112_v39, %v1116_v40  ;;  %1779 = vmatpush.bf16.msrb.mxu1 %v3266_v35 }
  0xfe   : > { %v950_v46 = vpack.c.b16 %v935_v42, %v934_v41  ;;  %1550 = vmatmul.bf16.gmra.mxu2 %v3823_v45  ;;  %v824_v49 = vadd.f32 %v3718_v53, %v800_v44 }
 0x100   : > { %v985_v47 = vshrl.u32 %v950_v46, 16  ;;  %v988_v51 = vshll.u32 %v950_v46, 16  ;;  %v844_v54 = vmax.f32 %v824_v49, 0.0 }
 0x102   : > { %v987_v50 = vrot.slane %v985_v47, 7  ;;  %v864_v4 = vpack.c.bf16 %v844_v54, %v844_v54  ;;  %v3885_v54 = vld [vmem:[%s4453_s4 + $0x1f8] sm:$0xff] }
 0x103   : > { %v763_v52 = vpop.f32.mrf.mxu0  ;;  %2182 = vmatpush.bf16.msra.mxu0 %v3885_v54 }
 0x104   : > { %v801_v56 = vmul.f32 %v3709_v48, %v763_v52  ;;  %v990_v57 = vor.u32 %v988_v51, %v987_v50  ;;  %v1063_v58 = vsel %vm3737_vm2, %v987_v50, 0  ;;  %v936_v15 = vunpack.c.l.b16 %v864_v4  ;;  %v3287_v51 = vld [vmem:[%s4453_s4 + $0xb8] sm:$0xff] }
 0x105   : > { %v1204_v1 = vrot.slane %v1063_v58, 1  ;;  %v1126_v3 = vshll.u32 %v1063_v58, 16  ;;  %1872 = vmatpush.bf16.msrb.mxu3 %v3287_v51 }
 0x106   : > { %v825_v61 = vadd.f32 %v3718_v53, %v801_v56  ;;  %v3839_v63 = vsel %vm3737_vm2, 0, %v990_v57 }
 0x107   : > { %1506 = vmatmul.bf16.gmra.mxu1 %v3839_v63  ;;  %2151 = vmatmul.bf16.gmra.mxu0 %v3839_v63  ;;  %v1203_v0 = vrot.slane %v3839_v63, 1  ;;  %v1121_v2 = vshll.u32 %v3839_v63, 16  ;;  %v1119_v7 = vshrl.u32 %v3839_v63, 16  ;;  %v1128_v14 = vrot.slane %v1126_v3, 1  ;;  %v3899_v3 = vld [vmem:[%s4453_s4 + $0x1f0] sm:$0xff] }
 0x108   : > { %v845_v5 = vmax.f32 %v825_v61, 0.0  ;;  %2183 = vmatpush.bf16.msra.mxu0 %v3899_v3 }
 0x109   : > { %v3846_v6 = vsel %vm1190_vm3, %v1203_v0, %v1204_v1  ;;  %v1123_v9 = vrot.slane %v1121_v2, 1  ;;  %v3286_v1 = vld [vmem:[%s4453_s4 + $0xb0] sm:$0xff] }
 0x10a   : > { %v865_v10 = vpack.c.bf16 %v845_v5, %v845_v5  ;;  %1604 = vmatmul.bf16.gmra.mxu3 %v3846_v6 }
 0x10b   : > { %v766_v11 = vpop.f32.mrf.mxu0  ;;  %v1124_v13 = vor.u32 %v1123_v9, %v1119_v7  ;;  %1873 = vmatpush.bf16.msrb.mxu3 %v3286_v1  ;;  %v3285_v7 = vld [vmem:[%s4453_s4 + $0xa8] sm:$0xff] }
 0x10c   : > { %v937_v16 = vunpack.c.l.b16 %v865_v10  ;;  %v802_v17 = vmul.f32 %v3709_v48, %v766_v11  ;;  %v3909_v11 = vld [vmem:[%s4453_s4 + $0x1e8] sm:$0xff] }
 0x10d   : > { %v3852_v18 = vsel %vm1069_vm4, %v1124_v13, %v1128_v14  ;;  %2184 = vmatpush.bf16.msra.mxu0 %v3909_v11 }
 0x10e   : > { %v951_v19 = vpack.c.b16 %v937_v16, %v936_v15  ;;  %1555 = vmatmul.bf16.gmra.mxu2 %v3852_v18  ;;  %v826_v22 = vadd.f32 %v3718_v53, %v802_v17 }
 0x10f   : > { %1874 = vmatpush.bf16.msrb.mxu3 %v3285_v7 }
 0x110   : > { %v992_v21 = vshrl.u32 %v951_v19, 16  ;;  %v995_v25 = vshll.u32 %v951_v19, 16  ;;  %v846_v28 = vmax.f32 %v826_v22, 0.0  ;;  %v3273_v19 = vld [vmem:[%s4453_s4 + $0x48] sm:$0xff]  ;;  %v3284_v22 = vld [vmem:[%s4453_s4 + $0xa0] sm:$0xff] }
 0x111   : > { %1829 = vmatpush.bf16.msrb.mxu2 %v3273_v19  ;;  %v3989_v19 = vld [vmem:[%s4453_s4 + $0x1c8] sm:$0xff] }
 0x112   : > { %v994_v23 = vrot.slane %v992_v21, 7  ;;  %v866_v44 = vpack.c.bf16 %v846_v28, %v846_v28  ;;  %v3265_v21 = vld [vmem:[%s4453_s4 + $0x8] sm:$0xff]  ;;  %v3934_v28 = vld [vmem:[%s4453_s4 + $0x1e0] sm:$0xff] }
 0x113   : > { %v768_v26 = vpop.f32.mrf.mxu0  ;;  %1780 = vmatpush.bf16.msrb.mxu1 %v3265_v21  ;;  %1875 = vmatpush.bf16.msrb.mxu3 %v3284_v22 }
 0x114   : > { %v803_v29 = vmul.f32 %v3709_v48, %v768_v26  ;;  %v997_v30 = vor.u32 %v995_v25, %v994_v23  ;;  %v1064_v31 = vsel %vm3737_vm2, %v994_v23, 0  ;;  %v938_v59 = vunpack.c.l.b16 %v866_v44  ;;  %2185 = vmatpush.bf16.msra.mxu0 %v3934_v28 }
 0x115   : > { %v1207_v40 = vrot.slane %v1064_v31, 1  ;;  %v1138_v42 = vshll.u32 %v1064_v31, 16  ;;  %v791_v23 = vmul.f32 %v3709_v48, %v3686_v43 }
 0x116   : > { %v827_v36 = vadd.f32 %v3718_v53, %v803_v29  ;;  %v3868_v37 = vsel %vm3737_vm2, 0, %v997_v30 }
 0x117   : > { %1511 = vmatmul.bf16.gmra.mxu1 %v3868_v37  ;;  %2156 = vmatmul.bf16.gmra.mxu0 %v3868_v37  ;;  %v1206_v39 = vrot.slane %v3868_v37, 1  ;;  %v1133_v41 = vshll.u32 %v3868_v37, 16  ;;  %v1131_v49 = vshrl.u32 %v3868_v37, 16  ;;  %v1140_v58 = vrot.slane %v1138_v42, 1  ;;  %v3283_v42 = vld [vmem:[%s4453_s4 + $0x98] sm:$0xff] }
 0x118   : > { %v847_v46 = vmax.f32 %v827_v36, 0.0  ;;  %v790_v36 = vmul.f32 %v3709_v48, %v3660_v34  ;;  %v815_v44 = vadd.f32 %v3718_v53, %v791_v23  ;;  %v3956_v34 = vld [vmem:[%s4453_s4 + $0x1d8] sm:$0xff]  ;;  %1876 = vmatpush.bf16.msrb.mxu3 %v3283_v42 }
 0x119   : > { %v3875_v47 = vsel %vm1190_vm3, %v1206_v39, %v1207_v40  ;;  %v1135_v50 = vrot.slane %v1133_v41, 1  ;;  %2186 = vmatpush.bf16.msra.mxu0 %v3956_v34 }
 0x11a   : > { %v867_v52 = vpack.c.bf16 %v847_v46, %v847_v46  ;;  %1609 = vmatmul.bf16.gmra.mxu3 %v3875_v47 }
 0x11b   : > { %v771_v56 = vpop.f32.mrf.mxu0  ;;  %v1136_v57 = vor.u32 %v1135_v50, %v1131_v49 }
 0x11c   : > { %v939_v60 = vunpack.c.l.b16 %v867_v52  ;;  %v804_v61 = vmul.f32 %v3709_v48, %v771_v56 }
 0x11d   : > { %v3890_v0 = vsel %vm1069_vm4, %v1136_v57, %v1140_v58  ;;  %v814_v58 = vadd.f32 %v3718_v53, %v790_v36  ;;  %v4013_v36 = vld [vmem:[%s4453_s4 + $0x1c0] sm:$0xff] }
 0x11e   : > { %v952_v2 = vpack.c.b16 %v939_v60, %v938_v59  ;;  %1560 = vmatmul.bf16.gmra.mxu2 %v3890_v0  ;;  %v828_v5 = vadd.f32 %v3718_v53, %v804_v61  ;;  %v3282_v60 = vld [vmem:[%s4453_s4 + $0x90] sm:$0xff]  ;;  %v835_v61 = vmax.f32 %v815_v44, 0.0 }
 0x11f   : > { %1877 = vmatpush.bf16.msrb.mxu3 %v3282_v60 }
 0x120   : > { %v999_v4 = vshrl.u32 %v952_v2, 16  ;;  %v1002_v10 = vshll.u32 %v952_v2, 16  ;;  %v848_v14 = vmax.f32 %v828_v5, 0.0  ;;  %v3973_v2 = vld [vmem:[%s4453_s4 + $0x1d0] sm:$0xff]  ;;  %v3264_v5 = vld [vmem:[%s4453_s4] sm:$0xff] }
 0x121   : > { %2187 = vmatpush.bf16.msra.mxu0 %v3973_v2  ;;  %1781 = vmatpush.bf16.msrb.mxu1 %v3264_v5 }
 0x122   : > { %v1001_v9 = vrot.slane %v999_v4, 7  ;;  %v868_v33 = vpack.c.bf16 %v848_v14, %v848_v14  ;;  %v3272_v4 = vld [vmem:[%s4453_s4 + $0x40] sm:$0xff]  ;;  %v876_v14 = vstv %s875_s0 }
 0x123   : > { %v773_v13 = vpop.f32.mrf.mxu0  ;;  %1830 = vmatpush.bf16.msrb.mxu2 %v3272_v4  ;;  %vm3995_vm5 = vcmp.eq.s32.totalorder %v876_v14, 1  ;;  %v3334_v4 = vld [vmem:[%s4453_s4 + $0x230] sm:$0xff] }
 0x124   : > { %v805_v15 = vmul.f32 %v3709_v48, %v773_v13  ;;  %v1004_v16 = vor.u32 %v1002_v10, %v1001_v9  ;;  %v1065_v17 = vsel %vm3737_vm2, %v1001_v9, 0  ;;  %v940_v52 = vunpack.c.l.b16 %v868_v33  ;;  %v3281_v13 = vld [vmem:[%s4453_s4 + $0x88] sm:$0xff] }
 0x125   : > { %v1210_v30 = vrot.slane %v1065_v17, 1  ;;  %v1150_v31 = vshll.u32 %v1065_v17, 16  ;;  %v834_v10 = vmax.f32 %v814_v58, 0.0  ;;  %3344 = vmatpush.bf16.msra.mxu1 %v3885_v54  ;;  %1878 = vmatpush.bf16.msrb.mxu3 %v3281_v13 }
 0x126   : > { %v829_v25 = vadd.f32 %v3718_v53, %v805_v15  ;;  %v3929_v26 = vsel %vm3737_vm2, 0, %v1004_v16  ;;  %v855_v15 = vpack.c.bf16 %v835_v61, %v835_v61  ;;  %2188 = vmatpush.bf16.msra.mxu0 %v3989_v19 }
 0x127   : > { %1516 = vmatmul.bf16.gmra.mxu1 %v3929_v26  ;;  %2161 = vmatmul.bf16.gmra.mxu0 %v3929_v26  ;;  %v1209_v29 = vrot.slane %v3929_v26, 1  ;;  %v1145_v43 = vshll.u32 %v3929_v26, 16  ;;  %v1143_v40 = vshrl.u32 %v3929_v26, 16  ;;  %v1152_v51 = vrot.slane %v1150_v31, 1  ;;  %v3280_v31 = vld [vmem:[%s4453_s4 + $0x80] sm:$0xff] }
 0x128   : > { %v849_v35 = vmax.f32 %v829_v25, 0.0  ;;  %v887_v54 = vsel %vm3995_vm5, %v855_v15, 0 }
 0x129   : > { %v3943_v39 = vsel %vm1190_vm3, %v1209_v29, %v1210_v30  ;;  %v1147_v41 = vrot.slane %v1145_v43, 1  ;;  %v854_v30 = vpack.c.bf16 %v834_v10, %v834_v10  ;;  %3345 = vmatpush.bf16.msra.mxu1 %v3899_v3  ;;  %1879 = vmatpush.bf16.msrb.mxu3 %v3280_v31  ;;  %v927_v58 = vunpack.c.l.b16 %v887_v54 }
 0x12a   : > { %v869_v46 = vpack.c.bf16 %v849_v35, %v849_v35  ;;  %1614 = vmatmul.bf16.gmra.mxu3 %v3943_v39  ;;  %2189 = vmatpush.bf16.msra.mxu0 %v4013_v36 }
 0x12b   : > { %v776_v49 = vpop.f32.mrf.mxu0  ;;  %v1148_v50 = vor.u32 %v1147_v41, %v1143_v40 }
 0x12c   : > { %v941_v56 = vunpack.c.l.b16 %v869_v46  ;;  %v806_v57 = vmul.f32 %v3709_v48, %v776_v49  ;;  %v3335_v46 = vld [vmem:[%s4453_s4 + $0x238] sm:$0xff] }
 0x12d   : > { %v3961_v59 = vsel %vm1069_vm4, %v1148_v50, %v1152_v51  ;;  %v886_v51 = vsel %vm3995_vm5, %v854_v30, 0  ;;  %3352 = vmatpush.bf16.msra.mxu2 %v3335_v46  ;;  %3346 = vmatpush.bf16.msra.mxu1 %v3909_v11 }
 0x12e   : > { %v953_v1 = vpack.c.b16 %v941_v56, %v940_v52  ;;  %1565 = vmatmul.bf16.gmra.mxu2 %v3961_v59  ;;  %v830_v9 = vadd.f32 %v3718_v53, %v806_v57  ;;  %2231 = vmatpush.bf16.msrb.mxu0 %v3335_v46  ;;  %v926_v5 = vunpack.c.l.b16 %v886_v51 }
 0x130   : > { %v1006_v7 = vshrl.u32 %v953_v1, 16  ;;  %v1009_v17 = vshll.u32 %v953_v1, 16  ;;  %v850_v22 = vmax.f32 %v830_v9, 0.0  ;;  %v946_v14 = vpack.c.b16 %v927_v58, %v926_v5 }
 0x131   : > { %3353 = vmatpush.bf16.msra.mxu2 %v3334_v4  ;;  %3347 = vmatpush.bf16.msra.mxu1 %v3934_v28 }
 0x132   : > { %v1008_v16 = vrot.slane %v1006_v7, 7  ;;  %v870_v49 = vpack.c.bf16 %v850_v22, %v850_v22  ;;  %2232 = vmatpush.bf16.msrb.mxu0 %v3334_v4  ;;  %v3333_v22 = vld [vmem:[%s4453_s4 + $0x228] sm:$0xff] }
 0x133   : > { %v778_v21 = vpop.f32.mrf.mxu0 }
 0x134   : > { %v807_v23 = vmul.f32 %v3709_v48, %v778_v21  ;;  %v1011_v25 = vor.u32 %v1009_v17, %v1008_v16  ;;  %v1066_v29 = vsel %vm3737_vm2, %v1008_v16, 0  ;;  %v942_v7 = vunpack.c.l.b16 %v870_v49 }
 0x135   : > { %v1213_v41 = vrot.slane %v1066_v29, 1  ;;  %v1162_v44 = vshll.u32 %v1066_v29, 16  ;;  %v957_v29 = vshrl.u32 %v946_v14, 16  ;;  %3354 = vmatpush.bf16.msra.mxu2 %v3333_v22  ;;  %3348 = vmatpush.bf16.msra.mxu1 %v3956_v34 }
 0x136   : > { %v831_v33 = vadd.f32 %v3718_v53, %v807_v23  ;;  %v4007_v35 = vsel %vm3737_vm2, 0, %v1011_v25  ;;  %v880_v23 = vstv %s879_s14  ;;  %2233 = vmatpush.bf16.msrb.mxu0 %v3333_v22 }
 0x137   : > { %1521 = vmatmul.bf16.gmra.mxu1 %v4007_v35  ;;  %2166 = vmatmul.bf16.gmra.mxu0 %v4007_v35  ;;  %v1212_v40 = vrot.slane %v4007_v35, 1  ;;  %v1157_v42 = vshll.u32 %v4007_v35, 16  ;;  %v1155_v56 = vshrl.u32 %v4007_v35, 16  ;;  %v1164_v1 = vrot.slane %v1162_v44, 1 }
 0x138   : > { %v851_v50 = vmax.f32 %v831_v33, 0.0  ;;  %vm4055_vm6 = vcmp.eq.s32.totalorder %v880_v23, 1 }
 0x139   : > { %v4026_v52 = vsel %vm1190_vm3, %v1212_v40, %v1213_v41  ;;  %v1159_v57 = vrot.slane %v1157_v42, 1  ;;  %v3332_v40 = vld [vmem:[%s4453_s4 + $0x220] sm:$0xff]  ;;  %3349 = vmatpush.bf16.msra.mxu1 %v3973_v2  ;;  %v3330_v2 = vld [vmem:[%s4453_s4 + $0x210] sm:$0xff] }
 0x13a   : > { %v871_v60 = vpack.c.bf16 %v851_v50, %v851_v50  ;;  %1619 = vmatmul.bf16.gmra.mxu3 %v4026_v52  ;;  %3355 = vmatpush.bf16.msra.mxu2 %v3332_v40 }
 0x13b   : > { %v781_v3 = vpop.f32.mrf.mxu0  ;;  %v1160_v61 = vor.u32 %v1159_v57, %v1155_v56  ;;  %v960_v56 = vshll.u32 %v946_v14, 16  ;;  %2234 = vmatpush.bf16.msrb.mxu0 %v3332_v40 }
 0x13c   : > { %v943_v9 = vunpack.c.l.b16 %v871_v60  ;;  %v808_v10 = vmul.f32 %v3709_v48, %v781_v3 }
 0x13d   : > { %v4038_v13 = vsel %vm1069_vm4, %v1160_v61, %v1164_v1  ;;  %3350 = vmatpush.bf16.msra.mxu1 %v3989_v19 }
 0x13e   : > { %v954_v15 = vpack.c.b16 %v943_v9, %v942_v7  ;;  %v832_v16 = vadd.f32 %v3718_v53, %v808_v10  ;;  %1570 = vmatmul.bf16.gmra.mxu2 %v4038_v13 }
 0x140   : > { %v1013_v17 = vshrl.u32 %v954_v15, 16  ;;  %v852_v21 = vmax.f32 %v832_v16, 0.0  ;;  %v1016_v11 = vshll.u32 %v954_v15, 16  ;;  %v3329_v16 = vld [vmem:[%s4453_s4 + $0x208] sm:$0xff] }
 0x141   : > { %3351 = vmatpush.bf16.msra.mxu1 %v4013_v36 }
 0x142   : > { %v1015_v25 = vrot.slane %v1013_v17, 7  ;;  %v872_v43 = vpack.c.bf16 %v852_v21, %v852_v21 }
 0x143   : > { %v783_v30 = vpop.f32.mrf.mxu0 }
 0x144   : > { %v809_v31 = vmul.f32 %v3709_v48, %v783_v30  ;;  %v1018_v54 = vor.u32 %v1016_v11, %v1015_v25  ;;  %v1067_v33 = vsel %vm3737_vm2, %v1015_v25, 0  ;;  %v959_v48 = vrot.slane %v957_v29, 7 }
 0x145   : > { %v1287_v46 = vrot.slane %v1067_v33, 1  ;;  %v1279_v50 = vshll.u32 %v1067_v33, 16  ;;  %v904_v34 = vsel %vm4055_vm6, %v872_v43, 0  ;;  %v3328_v43 = vld [vmem:[%s4453_s4 + $0x200] sm:$0xff] }
 0x146   : > { %v833_v41 = vadd.f32 %v3718_v53, %v809_v31  ;;  %v1057_v42 = vsel %vm3737_vm2, 0, %v1018_v54  ;;  %v3331_v53 = vld [vmem:[%s4453_s4 + $0x218] sm:$0xff]  ;;  %v962_v61 = vor.u32 %v960_v56, %v959_v48  ;;  %v944_v1 = vunpack.c.l.b16 %v904_v34 }
 0x147   : > { %1526 = vmatmul.bf16.gmra.mxu1 %v1057_v42  ;;  %2171 = vmatmul.bf16.gmra.mxu0 %v1057_v42  ;;  %v1286_v44 = vrot.slane %v1057_v42, 1  ;;  %v1274_v49 = vshll.u32 %v1057_v42, 16  ;;  %v1272_v58 = vshrl.u32 %v1057_v42, 16  ;;  %v1281_v5 = vrot.slane %v1279_v50, 1 }
 0x148   : > { %v853_v51 = vmax.f32 %v833_v41, 0.0  ;;  %3356 = vmatpush.bf16.msra.mxu2 %v3331_v53  ;;  %2235 = vmatpush.bf16.msrb.mxu0 %v3331_v53  ;;  %v1049_v14 = vsel %vm3737_vm2, 0, %v962_v61  ;;  %v1059_v23 = vsel %vm3737_vm2, %v959_v48, 0 }
 0x149   : > { %v4069_v57 = vsel %vm1190_vm3, %v1286_v44, %v1287_v46  ;;  %v1276_v60 = vrot.slane %v1274_v49, 1  ;;  %v1073_v17 = vshll.u32 %v1049_v14, 16  ;;  %v1191_v30 = vrot.slane %v1049_v14, 1 }
 0x14a   : > { %v873_v3 = vpack.c.bf16 %v853_v51, %v853_v51  ;;  %1624 = vmatmul.bf16.gmra.mxu3 %v4069_v57  ;;  %v1071_v36 = vshrl.u32 %v1049_v14, 16  ;;  %v1192_v54 = vrot.slane %v1059_v23, 1  ;;  %v1078_v33 = vshll.u32 %v1059_v23, 16 }
 0x14b   : > { %v1277_v4 = vor.u32 %v1276_v60, %v1272_v58  ;;  %v1075_v25 = vrot.slane %v1073_v17, 1 }
 0x14c   : > { %v905_v7 = vsel %vm4055_vm6, %v873_v3, 0  ;;  %3357 = vmatpush.bf16.msra.mxu2 %v3330_v2  ;;  %2236 = vmatpush.bf16.msrb.mxu0 %v3330_v2  ;;  %v1193_v40 = vsel %vm1190_vm3, %v1191_v30, %v1192_v54  ;;  %v1080_v41 = vrot.slane %v1078_v33, 1 }
 0x14d   : > { %v945_v9 = vunpack.c.l.b16 %v905_v7  ;;  %v4079_v10 = vsel %vm1069_vm4, %v1277_v4, %v1281_v5  ;;  %v1076_v28 = vor.u32 %v1075_v25, %v1071_v36 }
 0x14e   : > { %1575 = vmatmul.bf16.gmra.mxu2 %v4079_v10 }
 0x14f   : > { %v955_v15 = vpack.c.b16 %v945_v9, %v944_v1  ;;  %v1081_v44 = vsel %vm1069_vm4, %v1076_v28, %v1080_v41 }
 0x150   : > { %3358 = vmatpush.bf16.msra.mxu2 %v3329_v16  ;;  %2237 = vmatpush.bf16.msrb.mxu0 %v3329_v16 }
 0x151   : > { %v1020_v19 = vshrl.u32 %v955_v15, 16  ;;  %v1023_v21 = vshll.u32 %v955_v15, 16 }
 0x153   : > { %v4088_v22 = vrot.slane %v1020_v19, 7 }
 0x154   : > { %v1492_v11 = vpop.f32.mrf.mxu1  ;;  %3359 = vmatpush.bf16.msra.mxu2 %v3328_v43  ;;  %2238 = vmatpush.bf16.msrb.mxu0 %v3328_v43 }
 0x155   : > { %v1025_v29 = vor.u32 %v1023_v21, %v4088_v22 }
 0x157   : > { %1782 = vmatmul.bf16.vlgmr.msrb.gmra.mxu1 %v1049_v14  ;;  %v4098_v31 = vsel %vm3737_vm2, 0, %v1025_v29 }
 0x158   : > { %2176 = vmatmul.bf16.gmra.mxu0 %v4098_v31 }
 0x15a   : > { %1880 = vmatmul.bf16.vlgmr.msrb.gmra.mxu3 %v1193_v40 }
 0x15c   : > { %v1494_v42 = vpop.f32.mrf.mxu1 }
 0x15d   : > { %v1590_v48 = vpop.f32.mrf.mxu3 }
 0x15e   : > { %1831 = vmatmul.bf16.vlgmr.msrb.gmra.mxu2 %v1081_v44 }
 0x161   : > { %v1541_v46 = vpop.f32.mrf.mxu2 }
 0x162   : > { %v1542_v49 = vadd.f32 %v1541_v46, %v1492_v11 }
 0x164   : > { %v1497_v50 = vpop.f32.mrf.mxu1  ;;  %v4103_v34 = vpop.f32.mrf.mxu0  ;;  %v4105_v51 = vadd.f32 %v1590_v48, %v1542_v49 }
 0x165   : > { %v1592_v56 = vpop.f32.mrf.mxu3 }
 0x167   : > { %1787 = vmatmul.bf16.gmra.mxu1 %v3753_v20 }
 0x168   : > { %2190 = vmatmul.bf16.vlgmr.msra.gmra.mxu0 %v3794_v8 }
 0x169   : > { %v1543_v53 = vpop.f32.mrf.mxu2 }
 0x16a   : > { %v1544_v58 = vadd.f32 %v1543_v53, %v1494_v42  ;;  %1885 = vmatmul.bf16.gmra.mxu3 %v3759_v27 }
 0x16c   : > { %v1499_v60 = vpop.f32.mrf.mxu1  ;;  %v4110_v3 = vpop.f32.mrf.mxu0  ;;  %v4112_v61 = vadd.f32 %v1592_v56, %v1544_v58 }
 0x16d   : > { %v1595_v1 = vpop.f32.mrf.mxu3 }
 0x16e   : > { %1836 = vmatmul.bf16.gmra.mxu2 %v3765_v38 }
 0x171   : > { %v1546_v4 = vpop.f32.mrf.mxu2 }
 0x172   : > { %v1547_v5 = vadd.f32 %v1546_v4, %v1497_v50 }
 0x174   : > { %v1502_v7 = vpop.f32.mrf.mxu1  ;;  %v4115_v2 = vpop.f32.mrf.mxu0  ;;  %v4117_v20 = vadd.f32 %v1595_v1, %v1547_v5 }
 0x175   : > { %v1597_v9 = vpop.f32.mrf.mxu3 }
 0x177   : > { %1792 = vmatmul.bf16.gmra.mxu1 %v3781_v55 }
 0x178   : > { %2239 = vmatmul.bf16.vlgmr.msrb.gmra.mxu0 %v3788_v62 }
 0x179   : > { %v1548_v27 = vpop.f32.mrf.mxu2 }
 0x17a   : > { %v1549_v14 = vadd.f32 %v1548_v27, %v1499_v60  ;;  %1890 = vmatmul.bf16.gmra.mxu3 %v3788_v62 }
 0x17c   : > { %v1504_v15 = vpop.f32.mrf.mxu1  ;;  %v4122_v16 = vpop.f32.mrf.mxu0  ;;  %v4124_v38 = vadd.f32 %v1597_v9, %v1549_v14 }
 0x17d   : > { %v1600_v17 = vpop.f32.mrf.mxu3 }
 0x17e   : > { %1841 = vmatmul.bf16.gmra.mxu2 %v3794_v8 }
 0x181   : > { %v1551_v19 = vpop.f32.mrf.mxu2 }
 0x182   : > { %v1552_v21 = vadd.f32 %v1551_v19, %v1502_v7 }
 0x184   : > { %v1507_v11 = vpop.f32.mrf.mxu1  ;;  %v4127_v23 = vpop.f32.mrf.mxu0  ;;  %v4129_v55 = vadd.f32 %v1600_v17, %v1552_v21 }
 0x185   : > { %v1602_v25 = vpop.f32.mrf.mxu3 }
 0x187   : > { %1797 = vmatmul.bf16.gmra.mxu1 %v3810_v24 }
 0x189   : > { %v1553_v29 = vpop.f32.mrf.mxu2 }
 0x18a   : > { %v1554_v62 = vadd.f32 %v1553_v29, %v1504_v15  ;;  %1895 = vmatmul.bf16.gmra.mxu3 %v3817_v32 }
 0x18c   : > { %v1509_v30 = vpop.f32.mrf.mxu1  ;;  %v4133_v43 = vpop.f32.mrf.mxu0  ;;  %v4135_v36 = vadd.f32 %v1602_v25, %v1554_v62 }
 0x18d   : > { %v1605_v8 = vpop.f32.mrf.mxu3 }
 0x18e   : > { %1846 = vmatmul.bf16.gmra.mxu2 %v3823_v45 }
 0x191   : > { %v1556_v54 = vpop.f32.mrf.mxu2 }
 0x192   : > { %v1557_v33 = vadd.f32 %v1556_v54, %v1507_v11 }
 0x194   : > { %v1512_v40 = vpop.f32.mrf.mxu1  ;;  %v4138_v28 = vpop.f32.mrf.mxu0  ;;  %v4140_v41 = vadd.f32 %v1605_v8, %v1557_v33 }
 0x195   : > { %v1607_v24 = vpop.f32.mrf.mxu3 }
 0x197   : > { %1802 = vmatmul.bf16.gmra.mxu1 %v3839_v63 }
 0x199   : > { %v1558_v42 = vpop.f32.mrf.mxu2 }
 0x19a   : > { %v1559_v48 = vadd.f32 %v1558_v42, %v1509_v30  ;;  %1900 = vmatmul.bf16.gmra.mxu3 %v3846_v6 }
 0x19c   : > { %v1514_v44 = vpop.f32.mrf.mxu1  ;;  %v4144_v46 = vpop.f32.mrf.mxu0  ;;  %v4146_v49 = vadd.f32 %v1607_v24, %v1559_v48 }
 0x19d   : > { %v1610_v50 = vpop.f32.mrf.mxu3 }
 0x19e   : > { %1851 = vmatmul.bf16.gmra.mxu2 %v3852_v18 }
 0x1a1   : > { %v1561_v56 = vpop.f32.mrf.mxu2 }
 0x1a2   : > { %v1562_v53 = vadd.f32 %v1561_v56, %v1512_v40 }
 0x1a4   : > { %v1517_v58 = vpop.f32.mrf.mxu1  ;;  %v4149_v60 = vpop.f32.mrf.mxu0  ;;  %v4151_v1 = vadd.f32 %v1610_v50, %v1562_v53 }
 0x1a5   : > { %v4153_v63 = vpop.f32.mrf.mxu3 }
 0x1a7   : > { %1807 = vmatmul.bf16.gmra.mxu1 %v3868_v37 }
 0x1a9   : > { %v1563_v4 = vpop.f32.mrf.mxu2 }
 0x1aa   : > { %v4156_v5 = vadd.f32 %v1563_v4, %v1514_v44  ;;  %1905 = vmatmul.bf16.gmra.mxu3 %v3875_v47  ;;  %v3343_v44 = vld [vmem:[%s4454_s5 + $0x38] sm:$0xff]  ;;  %v3341_v4 = vld [vmem:[%s4454_s5 + $0x28] sm:$0xff] }
 0x1ab   : > { %2424 = vmatpush.bf16.msra.mxu0 %v3343_v44  ;;  %3360 = vmatpush.bf16.msra.mxu3 %v3343_v44 }
 0x1ac   : > { %v1519_v7 = vpop.f32.mrf.mxu1  ;;  %v4159_v9 = vpop.f32.mrf.mxu0 }
 0x1ad   : > { %v1615_v27 = vpop.f32.mrf.mxu3 }
 0x1ae   : > { %1856 = vmatmul.bf16.gmra.mxu2 %v3890_v0 }
 0x1b1   : > { %v1566_v14 = vpop.f32.mrf.mxu2 }
 0x1b2   : > { %v1567_v15 = vadd.f32 %v1566_v14, %v1517_v58 }
 0x1b4   : > { %v1522_v17 = vpop.f32.mrf.mxu1  ;;  %v4162_v19 = vpop.f32.mrf.mxu0  ;;  %v4164_v21 = vadd.f32 %v1615_v27, %v1567_v15 }
 0x1b5   : > { %v4166_v11 = vpop.f32.mrf.mxu3 }
 0x1b7   : > { %1812 = vmatmul.bf16.gmra.mxu1 %v3929_v26 }
 0x1b9   : > { %v1568_v37 = vpop.f32.mrf.mxu2 }
 0x1ba   : > { %v4169_v25 = vadd.f32 %v1568_v37, %v1519_v7  ;;  %1910 = vmatmul.bf16.gmra.mxu3 %v3943_v39 }
 0x1bc   : > { %v1524_v29 = vpop.f32.mrf.mxu1  ;;  %v4172_v62 = vpop.f32.mrf.mxu0 }
 0x1bd   : > { %v1620_v30 = vpop.f32.mrf.mxu3 }
 0x1be   : > { %1861 = vmatmul.bf16.gmra.mxu2 %v3961_v59 }
 0x1c1   : > { %v1571_v8 = vpop.f32.mrf.mxu2 }
 0x1c2   : > { %v1572_v54 = vadd.f32 %v1571_v8, %v1522_v17  ;;  %v3340_v17 = vld [vmem:[%s4454_s5 + $0x20] sm:$0xff] }
 0x1c4   : > { %v1527_v33 = vpop.f32.mrf.mxu1  ;;  %v4175_v40 = vpop.f32.mrf.mxu0  ;;  %v4177_v24 = vadd.f32 %v1620_v30, %v1572_v54  ;;  %v3339_v30 = vld [vmem:[%s4454_s5 + $0x18] sm:$0xff] }
 0x1c5   : > { %4473 = vst [vmem:[#allocation4_spill] sm:$0xff] %v4175_v40  ;;  %v4180_v26 = vpop.f32.mrf.mxu3 }
 0x1c7   : > { %1817 = vmatmul.bf16.gmra.mxu1 %v4007_v35  ;;  %v3342_v35 = vld [vmem:[%s4454_s5 + $0x30] sm:$0xff] }
 0x1c8   : > { %2425 = vmatpush.bf16.msra.mxu0 %v3342_v35  ;;  %3361 = vmatpush.bf16.msra.mxu3 %v3342_v35 }
 0x1c9   : > { %v1573_v42 = vpop.f32.mrf.mxu2 }
 0x1ca   : > { %v4182_v48 = vadd.f32 %v1573_v42, %v1524_v29  ;;  %1915 = vmatmul.bf16.gmra.mxu3 %v4026_v52  ;;  %v3337_v42 = vld [vmem:[%s4454_s5 + $0x8] sm:$0xff] }
 0x1cc   : > { %v1529_v50 = vpop.f32.mrf.mxu1  ;;  %v4188_v56 = vpop.f32.mrf.mxu0  ;;  %2426 = vmatpush.bf16.msra.mxu0 %v3341_v4  ;;  %3362 = vmatpush.bf16.msra.mxu3 %v3341_v4 }
 0x1cd   : > { %4474 = vst [vmem:[#allocation5_spill] sm:$0xff] %v4188_v56  ;;  %v1625_v7 = vpop.f32.mrf.mxu3 }
 0x1ce   : > { %1866 = vmatmul.bf16.gmra.mxu2 %v4038_v13 }
 0x1d0   : > { %2427 = vmatpush.bf16.msra.mxu0 %v3340_v17  ;;  %3363 = vmatpush.bf16.msra.mxu3 %v3340_v17 }
 0x1d1   : > { %v1576_v53 = vpop.f32.mrf.mxu2 }
 0x1d2   : > { %v1577_v58 = vadd.f32 %v1576_v53, %v1527_v33 }
 0x1d4   : > { %v1783_v27 = vpop.f32.mrf.mxu1  ;;  %v4197_v14 = vadd.f32 %v1625_v7, %v1577_v58  ;;  %2428 = vmatpush.bf16.msra.mxu0 %v3339_v30  ;;  %3364 = vmatpush.bf16.msra.mxu3 %v3339_v30 }
 0x1d5   : > { %v4199_v15 = vpop.f32.mrf.mxu0  ;;  %v4224_v53 = vpop.f32.mrf.mxu3 }
 0x1d6   : > { %4475 = vst [vmem:[#allocation6_spill] sm:$0xff] %v4199_v15 }
 0x1d7   : > { %2195 = vmatmul.bf16.vlgmr.msra.gmra.mxu1 %v3823_v45  ;;  %v3338_v45 = vld [vmem:[%s4454_s5 + $0x10] sm:$0xff] }
 0x1d8   : > { %2429 = vmatpush.bf16.msra.mxu0 %v3338_v45  ;;  %3365 = vmatpush.bf16.msra.mxu3 %v3338_v45 }
 0x1d9   : > { %v1578_v37 = vpop.f32.mrf.mxu2 }
 0x1da   : > { %v4205_v29 = vadd.f32 %v1578_v37, %v1529_v50 }
 0x1dc   : > { %v1785_v8 = vpop.f32.mrf.mxu1  ;;  %2430 = vmatpush.bf16.msra.mxu0 %v3337_v42  ;;  %3366 = vmatpush.bf16.msra.mxu3 %v3337_v42 }
 0x1dd   : > { %v4210_v54 = vpop.f32.mrf.mxu0  ;;  %v1881_v45 = vpop.f32.mrf.mxu3 }
 0x1de   : > { %4476 = vst [vmem:[#allocation7_spill] sm:$0xff] %v4210_v54  ;;  %2244 = vmatmul.bf16.vlgmr.msra.gmra.mxu2 %v3817_v32  ;;  %v3336_v32 = vld [vmem:[%s4454_s5] sm:$0xff] }
 0x1e0   : > { %2431 = vmatpush.bf16.msra.mxu0 %v3336_v32  ;;  %3367 = vmatpush.bf16.msra.mxu3 %v3336_v32 }
 0x1e1   : > { %v1832_v33 = vpop.f32.mrf.mxu2 }
 0x1e4   : > { %v1788_v44 = vpop.f32.mrf.mxu1 }
 0x1e5   : > { %v1789_v50 = vadd.f32 %v1788_v44, %v4117_v20  ;;  %v2191_v35 = vpop.f32.mrf.mxu0  ;;  %v1784_v20 = vadd.f32 %v1783_v27, %v4105_v51  ;;  %v4238_v51 = vld [vmem:[%s4457_s8] ss:$0 sm:$0xff] }
 0x1e7   : > { %2200 = vmatmul.bf16.gmra.mxu1 %v3852_v18  ;;  %v1833_v42 = vadd.f32 %v1832_v33, %v1784_v20  ;;  %v2192_v18 = vadd.f32 %v2191_v35, %v4103_v34  ;;  %v1883_v33 = vpop.f32.mrf.mxu3 }
 0x1e9   : > { %v1834_v58 = vpop.f32.mrf.mxu2 }
 0x1ec   : > { %v1790_v4 = vpop.f32.mrf.mxu1 }
 0x1ed   : > { %v1791_v7 = vadd.f32 %v1790_v4, %v4124_v38  ;;  %v2193_v17 = vpop.f32.mrf.mxu0  ;;  %v1786_v38 = vadd.f32 %v1785_v8, %v4112_v61  ;;  %v1882_v4 = vadd.f32 %v1881_v45, %v1833_v42 }
 0x1ee   : > { %2249 = vmatmul.bf16.gmra.mxu2 %v3846_v6  ;;  %v2194_v34 = vadd.f32 %v2193_v17, %v4110_v3 }
 0x1ef   : > { %v1835_v56 = vadd.f32 %v1834_v58, %v1786_v38 }
 0x1f1   : > { %v1837_v37 = vpop.f32.mrf.mxu2 }
 0x1f2   : > { %v4229_v30 = vadd.f32 %v1837_v37, %v1789_v50  ;;  %v1884_v50 = vadd.f32 %v1883_v33, %v1835_v56 }
 0x1f4   : > { %v1793_v44 = vpop.f32.mrf.mxu1 }
 0x1f5   : > { %v1794_v32 = vadd.f32 %v1793_v44, %v4129_v55  ;;  %v2240_v54 = vpop.f32.mrf.mxu0 }
 0x1f6   : > { %v2241_v15 = vadd.f32 %v2240_v54, %v2192_v18 }
 0x1f7   : > { %2205 = vmatmul.bf16.gmra.mxu1 %v3890_v0 }
 0x1f8   : > { %v2280_v40 = vadd.f32 %v2241_v15, %v1882_v4  ;;  %v4248_v15 = vld [vmem:[%s4458_s9] ss:$0 sm:$0xff] }
 0x1f9   : > { %v1839_v6 = vpop.f32.mrf.mxu2 }
 0x1fa   : > { %v4240_v27 = vadd.f32 %v1839_v6, %v1791_v7  ;;  %v2300_v61 = vmul.f32 %v4238_v51, %v2280_v40 }
 0x1fc   : > { %v1795_v55 = vpop.f32.mrf.mxu1  ;;  %v2320_v3 = vadd.f32 %v4248_v15, %v2300_v61 }
 0x1fd   : > { %v1796_v54 = vadd.f32 %v1795_v55, %v4135_v36  ;;  %v2242_v0 = vpop.f32.mrf.mxu0 }
 0x1fe   : > { %v2243_v8 = vadd.f32 %v2242_v0, %v2194_v34  ;;  %2254 = vmatmul.bf16.gmra.mxu2 %v3875_v47  ;;  %v2336_v37 = vmax.f32 %v2320_v3, 0.0  ;;  %v1613_v34 = vadd.f32 %v4153_v63, %v4156_v5  ;;  %v1618_v63 = vadd.f32 %v4166_v11, %v4169_v25 }
 0x200   : > { %v2281_v35 = vadd.f32 %v2243_v8, %v1884_v50  ;;  %v1922_v8 = vshrl.u32 %v4098_v31, 16 }
 0x201   : > { %v1842_v58 = vpop.f32.mrf.mxu2 }
 0x202   : > { %v2301_v7 = vmul.f32 %v4238_v51, %v2281_v35  ;;  %v4253_v17 = vadd.f32 %v1842_v58, %v1794_v32 }
 0x204   : > { %v2321_v36 = vadd.f32 %v4248_v15, %v2301_v7  ;;  %v1798_v56 = vpop.f32.mrf.mxu1 }
 0x205   : > { %v1799_v40 = vadd.f32 %v1798_v56, %v4140_v41 }
 0x206   : > { %v2337_v20 = vmax.f32 %v2321_v36, 0.0 }
 0x207   : > { %2210 = vmatmul.bf16.gmra.mxu1 %v3961_v59 }
 0x208   : > { %v2352_v45 = vpack.c.bf16 %v2337_v20, %v2336_v37 }
 0x209   : > { %v1844_v42 = vpop.f32.mrf.mxu2 }
 0x20a   : > { %v4258_v47 = vadd.f32 %v1844_v42, %v1796_v54  ;;  %2432 = vmatmul.bf16.vlgmr.msra.gmra.mxu0 %v2352_v45 }
 0x20c   : > { %v1800_v18 = vpop.f32.mrf.mxu1 }
 0x20d   : > { %v1801_v44 = vadd.f32 %v1800_v18, %v4146_v49 }
 0x20e   : > { %2259 = vmatmul.bf16.gmra.mxu2 %v3943_v39 }
 0x211   : > { %v1847_v32 = vpop.f32.mrf.mxu2 }
 0x212   : > { %v4262_v38 = vadd.f32 %v1847_v32, %v1799_v40  ;;  %v1886_v32 = vpop.f32.mrf.mxu3 }
 0x214   : > { %v1803_v4 = vpop.f32.mrf.mxu1 }
 0x215   : > { %v1804_v41 = vadd.f32 %v1803_v4, %v4151_v1 }
 0x217   : > { %2215 = vmatmul.bf16.gmra.mxu1 %v4038_v13  ;;  %v1924_v13 = vshll.u32 %v4098_v31, 16 }
 0x219   : > { %v1849_v6 = vpop.f32.mrf.mxu2  ;;  %v1926_v35 = vrot.slane %v1924_v13, 1 }
 0x21a   : > { %v4266_v59 = vadd.f32 %v1849_v6, %v1801_v44 }
 0x21b   : > { %v1927_v3 = vor.u32 %v1926_v35, %v1922_v8 }
 0x21c   : > { %v1805_v55 = vpop.f32.mrf.mxu1 }
 0x21d   : > { %v1806_v33 = vadd.f32 %v1805_v55, %v1613_v34 }
 0x21e   : > { %2264 = vmatmul.bf16.gmra.mxu2 %v4026_v52  ;;  %v1068_v52 = vsel %vm3737_vm2, %v4088_v22, 0  ;;  %v1936_v22 = vrot.slane %v4098_v31, 1 }
 0x21f   : > { %v1937_v56 = vrot.slane %v1068_v52, 1 }
 0x221   : > { %v1852_v49 = vpop.f32.mrf.mxu2  ;;  %v1938_v45 = vsel %vm1190_vm3, %v1936_v22, %v1937_v56 }
 0x222   : > { %v4271_v39 = vadd.f32 %v1852_v49, %v1804_v41  ;;  %v1628_v41 = vadd.f32 %v4224_v53, %v4205_v29 }
 0x224   : > { %v1808_v54 = vpop.f32.mrf.mxu1 }
 0x225   : > { %v1809_v0 = vadd.f32 %v1808_v54, %v4164_v21 }
 0x227   : > { %2220 = vmatmul.bf16.gmra.mxu1 %v4079_v10  ;;  %v1929_v10 = vshll.u32 %v1068_v52, 16  ;;  %v1887_v52 = vadd.f32 %v1886_v32, %v4229_v30 }
 0x229   : > { %v1854_v1 = vpop.f32.mrf.mxu2  ;;  %v1931_v7 = vrot.slane %v1929_v10, 1 }
 0x22a   : > { %v4276_v50 = vadd.f32 %v1854_v1, %v1806_v33 }
 0x22b   : > { %v1932_v25 = vsel %vm1069_vm4, %v1927_v3, %v1931_v7 }
 0x22c   : > { %v1810_v5 = vpop.f32.mrf.mxu1 }
 0x22d   : > { %v1811_v61 = vadd.f32 %v1810_v5, %v1618_v63 }
 0x22e   : > { %2269 = vmatmul.bf16.gmra.mxu2 %v4069_v57  ;;  %v1623_v57 = vadd.f32 %v4180_v26, %v4182_v48  ;;  %v1888_v48 = vpop.f32.mrf.mxu3 }
 0x22f   : > { %v1889_v35 = vadd.f32 %v1888_v48, %v4240_v27 }
 0x231   : > { %v1857_v21 = vpop.f32.mrf.mxu2 }
 0x232   : > { %v4285_v58 = vadd.f32 %v1857_v21, %v1809_v0 }
 0x234   : > { %v1813_v36 = vpop.f32.mrf.mxu1 }
 0x235   : > { %v1814_v11 = vadd.f32 %v1813_v36, %v4177_v24 }
 0x236   : > { %v1891_v0 = vpop.f32.mrf.mxu3 }
 0x237   : > { %2225 = vmatmul.bf16.gmra.mxu1 %v1932_v25  ;;  %v1892_v27 = vadd.f32 %v1891_v0, %v4253_v17 }
 0x239   : > { %v1859_v12 = vpop.f32.mrf.mxu2 }
 0x23a   : > { %v4290_v40 = vadd.f32 %v1859_v12, %v1811_v61 }
 0x23c   : > { %v1815_v37 = vpop.f32.mrf.mxu1 }
 0x23d   : > { %v1816_v20 = vadd.f32 %v1815_v37, %v1623_v57 }
 0x23e   : > { %2274 = vmatmul.bf16.gmra.mxu2 %v1938_v45  ;;  %v1893_v29 = vpop.f32.mrf.mxu3 }
 0x241   : > { %v1862_v42 = vpop.f32.mrf.mxu2 }
 0x242   : > { %v4295_v18 = vadd.f32 %v1862_v42, %v1814_v11 }
 0x244   : > { %v1818_v24 = vpop.f32.mrf.mxu1 }
 0x245   : > { %v1819_v44 = vadd.f32 %v1818_v24, %v4197_v14 }
 0x246   : > { %v1896_v11 = vpop.f32.mrf.mxu3 }
 0x247   : > { %v1897_v0 = vadd.f32 %v1896_v11, %v4262_v38 }
 0x249   : > { %v1864_v4 = vpop.f32.mrf.mxu2 }
 0x24a   : > { %v4298_v31 = vadd.f32 %v1864_v4, %v1816_v20 }
 0x24c   : > { %v1820_v6 = vpop.f32.mrf.mxu1 }
 0x24d   : > { %v1821_v26 = vadd.f32 %v1820_v6, %v1628_v41 }
 0x24e   : > { %v1898_v42 = vpop.f32.mrf.mxu3 }
 0x251   : > { %v1867_v34 = vpop.f32.mrf.mxu2 }
 0x252   : > { %v4302_v55 = vadd.f32 %v1867_v34, %v1819_v44  ;;  %v1894_v44 = vadd.f32 %v1893_v29, %v4258_v47 }
 0x254   : > { %v2196_v33 = vpop.f32.mrf.mxu1 }
 0x255   : > { %v2197_v14 = vadd.f32 %v2196_v33, %v4115_v2 }
 0x256   : > { %v1901_v47 = vpop.f32.mrf.mxu3 }
 0x259   : > { %v1869_v49 = vpop.f32.mrf.mxu2 }
 0x25a   : > { %v4304_v54 = vadd.f32 %v1869_v49, %v1821_v26 }
 0x25c   : > { %v2198_v1 = vpop.f32.mrf.mxu1 }
 0x25d   : > { %v2199_v61 = vadd.f32 %v2198_v1, %v4122_v16 }
 0x261   : > { %v2245_v13 = vpop.f32.mrf.mxu2 }
 0x262   : > { %v2246_v63 = vadd.f32 %v2245_v13, %v2197_v14  ;;  %v4327_v13 = vld [vmem:[%s4459_s10] ss:$0 sm:$0xff] }
 0x264   : > { %v2201_v5 = vpop.f32.mrf.mxu1  ;;  %v2282_v53 = vadd.f32 %v2246_v63, %v1887_v52  ;;  %v585_v63 = vld [vmem:[%s3595_s22] sm:$0xff]  }
 0x265   : > { %v2202_v30 = vadd.f32 %v2201_v5, %v4127_v23 }
 0x266   : > { %v2302_v10 = vmul.f32 %v4238_v51, %v2282_v53  ;;  %v2473_v53 = vunpack.c.l.bf16 %v585_v63 }
 0x268   : > { %v2322_v36 = vadd.f32 %v4248_v15, %v2302_v10 }
 0x269   : > { %v2247_v8 = vpop.f32.mrf.mxu2 }
 0x26a   : > { %v2248_v21 = vadd.f32 %v2247_v8, %v2199_v61  ;;  %v2338_v22 = vmax.f32 %v2322_v36, 0.0  ;;  %v1899_v8 = vadd.f32 %v1898_v42, %v4266_v59 }
 0x26c   : > { %v2283_v3 = vadd.f32 %v2248_v21, %v1889_v35  ;;  %v2203_v7 = vpop.f32.mrf.mxu1 }
 0x26d   : > { %v2204_v45 = vadd.f32 %v2203_v7, %v4133_v43 }
 0x26e   : > { %v2303_v2 = vmul.f32 %v4238_v51, %v2283_v3 }
 0x270   : > { %v2323_v25 = vadd.f32 %v4248_v15, %v2303_v2 }
 0x271   : > { %v2250_v12 = vpop.f32.mrf.mxu2 }
 0x272   : > { %v2339_v16 = vmax.f32 %v2323_v25, 0.0  ;;  %v2251_v56 = vadd.f32 %v2250_v12, %v2202_v30  ;;  %v2474_v12 = vunpack.c.h.bf16 %v585_v63 }
 0x274   : > { %v2353_v57 = vpack.c.bf16 %v2339_v16, %v2338_v22  ;;  %v2206_v37 = vpop.f32.mrf.mxu1  ;;  %v2284_v20 = vadd.f32 %v2251_v56, %v1892_v27 }
 0x275   : > { %v2207_v26 = vadd.f32 %v2206_v37, %v4138_v28  ;;  %v4333_v28 = vld [vmem:[%s4460_s11] ss:$0 sm:$0xff] }
 0x276   : > { %2437 = vmatmul.bf16.vlgmr.msra.gmra.mxu3 %v2353_v57  ;;  %v2304_v23 = vmul.f32 %v4238_v51, %v2284_v20 }
 0x278   : > { %v2324_v17 = vadd.f32 %v4248_v15, %v2304_v23 }
 0x279   : > { %v2252_v24 = vpop.f32.mrf.mxu2 }
 0x27a   : > { %v2253_v32 = vadd.f32 %v2252_v24, %v2204_v45  ;;  %v2340_v33 = vmax.f32 %v2324_v17, 0.0  ;;  %v1902_v45 = vadd.f32 %v1901_v47, %v4271_v39 }
 0x27c   : > { %v2285_v4 = vadd.f32 %v2253_v32, %v1894_v44  ;;  %v2208_v41 = vpop.f32.mrf.mxu1 }
 0x27d   : > { %v2209_v29 = vadd.f32 %v2208_v41, %v4144_v46  ;;  %v1903_v46 = vpop.f32.mrf.mxu3 }
 0x27e   : > { %v2305_v6 = vmul.f32 %v4238_v51, %v2285_v4 }
 0x280   : > { %v2325_v48 = vadd.f32 %v4248_v15, %v2305_v6  ;;  %v1904_v6 = vadd.f32 %v1903_v46, %v4276_v50 }
 0x281   : > { %v2255_v34 = vpop.f32.mrf.mxu2 }
 0x282   : > { %v2256_v43 = vadd.f32 %v2255_v34, %v2207_v26  ;;  %v2341_v49 = vmax.f32 %v2325_v48, 0.0 }
 0x284   : > { %v2211_v1 = vpop.f32.mrf.mxu1  ;;  %v2354_v14 = vpack.c.bf16 %v2341_v49, %v2340_v33  ;;  %v2286_v52 = vadd.f32 %v2256_v43, %v1897_v0 }
 0x285   : > { %v2212_v25 = vadd.f32 %v2211_v1, %v4149_v60  ;;  %v1906_v32 = vpop.f32.mrf.mxu3 }
 0x286   : > { %2442 = vmatmul.bf16.gmra.mxu3 %v2354_v14  ;;  %v2306_v35 = vmul.f32 %v4238_v51, %v2286_v52  ;;  %v1907_v50 = vadd.f32 %v1906_v32, %v4285_v58 }
 0x287   : > { %v2433_v5 = vpop.f32.mrf.mxu0 }
 0x288   : > { %v2493_v38 = vmul.f32 %v4327_v13, %v2433_v5  ;;  %v2326_v59 = vadd.f32 %v4248_v15, %v2306_v35 }
 0x289   : > { %v2257_v61 = vpop.f32.mrf.mxu2 }
 0x28a   : > { %v2513_v10 = vadd.f32 %v4333_v28, %v2493_v38  ;;  %v2258_v21 = vadd.f32 %v2257_v61, %v2209_v29  ;;  %v2342_v37 = vmax.f32 %v2326_v59, 0.0 }
 0x28c   : > { %v2529_v3 = vadd.f32 %v2513_v10, %v2473_v53  ;;  %v2287_v7 = vadd.f32 %v2258_v21, %v1899_v8  ;;  %v2213_v36 = vpop.f32.mrf.mxu1 }
 0x28d   : > { %v2214_v4 = vadd.f32 %v2213_v36, %v4159_v9  ;;  %v1908_v47 = vpop.f32.mrf.mxu3 }
 0x28e   : > { %v2545_v2 = vmax.f32 %v2529_v3, 0.0  ;;  %v2307_v11 = vmul.f32 %v4238_v51, %v2287_v7  ;;  %v1909_v38 = vadd.f32 %v1908_v47, %v4290_v40  ;;  %v4477_v3 = vld [vmem:[#allocation4_spill] sm:$0xff] }
 0x28f   : > { %v2435_v30 = vpop.f32.mrf.mxu0 }
 0x290   : > { %2561 = vst [vmem:[%s4344_s27] sm:$0xff] %v2545_v2  ;;  %v2494_v22 = vmul.f32 %v4327_v13, %v2435_v30  ;;  %v2327_v16 = vadd.f32 %v4248_v15, %v2307_v11 }
 0x291   : > { %v2260_v56 = vpop.f32.mrf.mxu2 }
 0x292   : > { %v2514_v27 = vadd.f32 %v4333_v28, %v2494_v22  ;;  %v2261_v57 = vadd.f32 %v2260_v56, %v2212_v25  ;;  %v2343_v20 = vmax.f32 %v2327_v16, 0.0 }
 0x294   : > { %v2530_v42 = vadd.f32 %v2514_v27, %v2474_v12  ;;  %v2216_v24 = vpop.f32.mrf.mxu1  ;;  %v2355_v44 = vpack.c.bf16 %v2343_v20, %v2342_v37  ;;  %v2288_v60 = vadd.f32 %v2261_v57, %v1902_v45  ;;  %v4478_v12 = vld [vmem:[#allocation5_spill] sm:$0xff] }
 0x295   : > { %v2217_v33 = vadd.f32 %v2216_v24, %v4162_v19  ;;  %v1911_v8 = vpop.f32.mrf.mxu3 }
 0x296   : > { %v2546_v23 = vmax.f32 %v2530_v42, 0.0  ;;  %2447 = vmatmul.bf16.gmra.mxu3 %v2355_v44  ;;  %v2308_v17 = vmul.f32 %v4238_v51, %v2288_v60  ;;  %v1912_v40 = vadd.f32 %v1911_v8, %v4295_v18  ;;  %v4479_v18 = vld [vmem:[#allocation6_spill] sm:$0xff] }
 0x298   : > { %2562 = vst [vmem:[%s4344_s27 + $0x8] sm:$0xff] %v2546_v23  ;;  %v2328_v43 = vadd.f32 %v4248_v15, %v2308_v17 }
 0x299   : > { %v2262_v41 = vpop.f32.mrf.mxu2 }
 0x29a   : > { %v2263_v26 = vadd.f32 %v2262_v41, %v2214_v4  ;;  %v2344_v1 = vmax.f32 %v2328_v43, 0.0 }
 0x29c   : > { %v2289_v48 = vadd.f32 %v2263_v26, %v1904_v6  ;;  %v2218_v34 = vpop.f32.mrf.mxu1 }
 0x29d   : > { %v2219_v29 = vadd.f32 %v2218_v34, %v4172_v62  ;;  %v1913_v30 = vpop.f32.mrf.mxu3 }
 0x29e   : > { %v2309_v39 = vmul.f32 %v4238_v51, %v2289_v48  ;;  %v1914_v56 = vadd.f32 %v1913_v30, %v4298_v31  ;;  %v4480_v48 = vld [vmem:[#allocation7_spill] sm:$0xff] }
 0x2a0   : > { %v2329_v49 = vadd.f32 %v4248_v15, %v2309_v39 }
 0x2a1   : > { %v2265_v0 = vpop.f32.mrf.mxu2 }
 0x2a2   : > { %v2266_v9 = vadd.f32 %v2265_v0, %v2217_v33  ;;  %v2345_v14 = vmax.f32 %v2329_v49, 0.0 }
 0x2a4   : > { %v2356_v63 = vpack.c.bf16 %v2345_v14, %v2344_v1  ;;  %v2290_v52 = vadd.f32 %v2266_v9, %v1907_v50  ;;  %v2221_v5 = vpop.f32.mrf.mxu1 }
 0x2a5   : > { %v2222_v58 = vadd.f32 %v2221_v5, %v4477_v3  ;;  %v1916_v24 = vpop.f32.mrf.mxu3 }
 0x2a6   : > { %2452 = vmatmul.bf16.gmra.mxu3 %v2356_v63  ;;  %v2310_v19 = vmul.f32 %v4238_v51, %v2290_v52  ;;  %v1917_v31 = vadd.f32 %v1916_v24, %v4302_v55  ;;  %v587_v52 = vld [vmem:[%s3595_s22 + $0x8] sm:$0xff]  }
 0x2a8   : > { %v2330_v21 = vadd.f32 %v4248_v15, %v2310_v19 }
 0x2a9   : > { %v2267_v53 = vpop.f32.mrf.mxu2 }
 0x2aa   : > { %v2268_v61 = vadd.f32 %v2267_v53, %v2219_v29  ;;  %v2346_v62 = vmax.f32 %v2330_v21, 0.0 }
 0x2ac   : > { %v2291_v35 = vadd.f32 %v2268_v61, %v1909_v38  ;;  %v2223_v36 = vpop.f32.mrf.mxu1  ;;  %v2476_v61 = vunpack.c.h.bf16 %v587_v52 }
 0x2ad   : > { %v2224_v22 = vadd.f32 %v2223_v36, %v4478_v12  ;;  %v1918_v39 = vpop.f32.mrf.mxu3 }
 0x2ae   : > { %v2311_v10 = vmul.f32 %v4238_v51, %v2291_v35  ;;  %v1919_v33 = vadd.f32 %v1918_v39, %v4304_v54  ;;  %v2475_v54 = vunpack.c.l.bf16 %v587_v52 }
 0x2b0   : > { %v2331_v7 = vadd.f32 %v4248_v15, %v2311_v10  ;;  %v589_v10 = vld [vmem:[%s3595_s22 + $0x10] sm:$0xff]  }
 0x2b1   : > { %v2270_v46 = vpop.f32.mrf.mxu2 }
 0x2b2   : > { %v2271_v2 = vadd.f32 %v2270_v46, %v2222_v58  ;;  %v2347_v11 = vmax.f32 %v2331_v7, 0.0  ;;  %v2477_v58 = vunpack.c.l.bf16 %v589_v10 }
 0x2b4   : > { %v2357_v59 = vpack.c.bf16 %v2347_v11, %v2346_v62  ;;  %v2292_v25 = vadd.f32 %v2271_v2, %v1912_v40  ;;  %v2226_v37 = vpop.f32.mrf.mxu1  ;;  %v2478_v11 = vunpack.c.h.bf16 %v589_v10 }
 0x2b5   : > { %v2227_v44 = vadd.f32 %v2226_v37, %v4479_v18 }
 0x2b6   : > { %2457 = vmatmul.bf16.gmra.mxu3 %v2357_v59  ;;  %v2312_v27 = vmul.f32 %v4238_v51, %v2292_v25  ;;  %v591_v25 = vld [vmem:[%s3595_s22 + $0x18] sm:$0xff]  }
 0x2b8   : > { %v2332_v42 = vadd.f32 %v4248_v15, %v2312_v27 }
 0x2b9   : > { %v2272_v16 = vpop.f32.mrf.mxu2 }
 0x2ba   : > { %v2273_v57 = vadd.f32 %v2272_v16, %v2224_v22  ;;  %v2348_v4 = vmax.f32 %v2332_v42, 0.0  ;;  %v2479_v16 = vunpack.c.l.bf16 %v591_v25 }
 0x2bc   : > { %v2293_v20 = vadd.f32 %v2273_v57, %v1914_v56  ;;  %v2228_v17 = vpop.f32.mrf.mxu1 }
 0x2bd   : > { %v2229_v34 = vadd.f32 %v2228_v17, %v4480_v48 }
 0x2be   : > { %v2313_v45 = vmul.f32 %v4238_v51, %v2293_v20 }
 0x2c0   : > { %v2333_v23 = vadd.f32 %v4248_v15, %v2313_v45  ;;  %v2480_v45 = vunpack.c.h.bf16 %v591_v25 }
 0x2c1   : > { %v2275_v60 = vpop.f32.mrf.mxu2 }
 0x2c2   : > { %v2276_v32 = vadd.f32 %v2275_v60, %v2227_v44  ;;  %v2349_v41 = vmax.f32 %v2333_v23, 0.0  ;;  %v593_v44 = vld [vmem:[%s3595_s22 + $0x20] sm:$0xff]  }
 0x2c4   : > { %v2358_v6 = vpack.c.bf16 %v2349_v41, %v2348_v4  ;;  %v2294_v26 = vadd.f32 %v2276_v32, %v1917_v31  ;;  %v2481_v32 = vunpack.c.l.bf16 %v593_v44 }
 0x2c6   : > { %2462 = vmatmul.bf16.gmra.mxu3 %v2358_v6  ;;  %v2314_v49 = vmul.f32 %v4238_v51, %v2294_v26  ;;  %v2482_v26 = vunpack.c.h.bf16 %v593_v44 }
 0x2c8   : > { %v2334_v55 = vadd.f32 %v4248_v15, %v2314_v49 }
 0x2c9   : > { %v2277_v43 = vpop.f32.mrf.mxu2 }
 0x2ca   : > { %v2278_v47 = vadd.f32 %v2277_v43, %v2229_v34  ;;  %v2350_v14 = vmax.f32 %v2334_v55, 0.0  ;;  %v595_v43 = vld [vmem:[%s3595_s22 + $0x28] sm:$0xff]  }
 0x2cc   : > { %v2295_v0 = vadd.f32 %v2278_v47, %v1919_v33  ;;  %v2483_v47 = vunpack.c.l.bf16 %v595_v43 }
 0x2ce   : > { %v2315_v9 = vmul.f32 %v4238_v51, %v2295_v0 }
 0x2d0   : > { %v2335_v1 = vadd.f32 %v4248_v15, %v2315_v9 }
 0x2d2   : > { %v2351_v50 = vmax.f32 %v2335_v1, 0.0 }
 0x2d4   : > { %v2359_v63 = vpack.c.bf16 %v2351_v50, %v2350_v14  ;;  %v2484_v50 = vunpack.c.h.bf16 %v595_v43 }
 0x2d6   : > { %2467 = vmatmul.bf16.gmra.mxu3 %v2359_v63 }
 0x2f9   : > { %v2438_v5 = vpop.f32.mrf.mxu3 }
 0x2fa   : > { %v2495_v29 = vmul.f32 %v4327_v13, %v2438_v5 }
 0x2fc   : > { %v2515_v53 = vadd.f32 %v4333_v28, %v2495_v29 }
 0x2fe   : > { %v2531_v38 = vadd.f32 %v2515_v53, %v2475_v54  ;;  %v597_v54 = vld [vmem:[%s3595_s22 + $0x30] sm:$0xff]  }
 0x300   : > { %v2547_v19 = vmax.f32 %v2531_v38, 0.0  ;;  %v2485_v38 = vunpack.c.l.bf16 %v597_v54 }
 0x301   : > { %v2440_v51 = vpop.f32.mrf.mxu3 }
 0x302   : > { %2563 = vst [vmem:[%s4344_s27 + $0x10] sm:$0xff] %v2547_v19  ;;  %v2496_v15 = vmul.f32 %v4327_v13, %v2440_v51 }
 0x304   : > { %v2516_v8 = vadd.f32 %v4333_v28, %v2496_v15 }
 0x306   : > { %v2532_v35 = vadd.f32 %v2516_v8, %v2476_v61 }
 0x308   : > { %v2548_v21 = vmax.f32 %v2532_v35, 0.0  ;;  %v2486_v35 = vunpack.c.h.bf16 %v597_v54 }
 0x309   : > { %v2443_v3 = vpop.f32.mrf.mxu3 }
 0x30a   : > { %2564 = vst [vmem:[%s4344_s27 + $0x18] sm:$0xff] %v2548_v21  ;;  %v2497_v7 = vmul.f32 %v4327_v13, %v2443_v3 }
 0x30c   : > { %v2517_v36 = vadd.f32 %v4333_v28, %v2497_v7 }
 0x30e   : > { %v2533_v46 = vadd.f32 %v2517_v36, %v2477_v58  ;;  %v599_v58 = vld [vmem:[%s3595_s22 + $0x38] sm:$0xff]  }
 0x310   : > { %v2549_v2 = vmax.f32 %v2533_v46, 0.0  ;;  %v2487_v46 = vunpack.c.l.bf16 %v599_v58 }
 0x311   : > { %v2445_v62 = vpop.f32.mrf.mxu3 }
 0x312   : > { %2565 = vst [vmem:[%s4344_s27 + $0x20] sm:$0xff] %v2549_v2  ;;  %v2498_v40 = vmul.f32 %v4327_v13, %v2445_v62 }
 0x314   : > { %v2518_v59 = vadd.f32 %v4333_v28, %v2498_v40 }
 0x316   : > { %v2534_v30 = vadd.f32 %v2518_v59, %v2478_v11 }
 0x318   : > { %v2550_v12 = vmax.f32 %v2534_v30, 0.0  ;;  %v2488_v30 = vunpack.c.h.bf16 %v599_v58 }
 0x319   : > { %v2448_v22 = vpop.f32.mrf.mxu3 }
 0x31a   : > { %2566 = vst [vmem:[%s4344_s27 + $0x28] sm:$0xff] %v2550_v12  ;;  %v2499_v56 = vmul.f32 %v4327_v13, %v2448_v22 }
 0x31c   : > { %v2519_v27 = vadd.f32 %v4333_v28, %v2499_v56 }
 0x31e   : > { %v2535_v57 = vadd.f32 %v2519_v27, %v2479_v16 }
 0x320   : > { %v2551_v37 = vmax.f32 %v2535_v57, 0.0 }
 0x321   : > { %v2450_v20 = vpop.f32.mrf.mxu3 }
 0x322   : > { %2567 = vst [vmem:[%s4344_s27 + $0x30] sm:$0xff] %v2551_v37  ;;  %v2500_v42 = vmul.f32 %v4327_v13, %v2450_v20 }
 0x324   : > { %v2520_v24 = vadd.f32 %v4333_v28, %v2500_v42 }
 0x326   : > { %v2536_v18 = vadd.f32 %v2520_v24, %v2480_v45 }
 0x328   : > { %v2552_v23 = vmax.f32 %v2536_v18, 0.0 }
 0x329   : > { %v2453_v60 = vpop.f32.mrf.mxu3 }
 0x32a   : > { %2568 = vst [vmem:[%s4344_s27 + $0x38] sm:$0xff] %v2552_v23  ;;  %v2501_v4 = vmul.f32 %v4327_v13, %v2453_v60 }
 0x32c   : > { %v2521_v41 = vadd.f32 %v4333_v28, %v2501_v4 }
 0x32e   : > { %v2537_v31 = vadd.f32 %v2521_v41, %v2481_v32 }
 0x330   : > { %v2553_v6 = vmax.f32 %v2537_v31, 0.0 }
 0x331   : > { %v2455_v17 = vpop.f32.mrf.mxu3 }
 0x332   : > { %2569 = vst [vmem:[%s4344_s27 + $0x40] sm:$0xff] %v2553_v6  ;;  %v2502_v48 = vmul.f32 %v4327_v13, %v2455_v17 }
 0x334   : > { %v2522_v34 = vadd.f32 %v4333_v28, %v2502_v48 }
 0x336   : > { %v2538_v39 = vadd.f32 %v2522_v34, %v2482_v26 }
 0x338   : > { %v2554_v33 = vmax.f32 %v2538_v39, 0.0 }
 0x339   : > { %v2458_v49 = vpop.f32.mrf.mxu3 }
 0x33a   : > { %2570 = vst [vmem:[%s4344_s27 + $0x48] sm:$0xff] %v2554_v33  ;;  %v2503_v0 = vmul.f32 %v4327_v13, %v2458_v49 }
 0x33c   : > { %v2523_v9 = vadd.f32 %v4333_v28, %v2503_v0 }
 0x33e   : > { %v2539_v55 = vadd.f32 %v2523_v9, %v2483_v47 }
 0x340   : > { %v2555_v1 = vmax.f32 %v2539_v55, 0.0 }
 0x341   : > { %v2460_v14 = vpop.f32.mrf.mxu3 }
 0x342   : > { %2571 = vst [vmem:[%s4344_s27 + $0x50] sm:$0xff] %v2555_v1  ;;  %v2504_v63 = vmul.f32 %v4327_v13, %v2460_v14 }
 0x344   : > { %v2524_v52 = vadd.f32 %v4333_v28, %v2504_v63 }
 0x346   : > { %v2540_v5 = vadd.f32 %v2524_v52, %v2484_v50 }
 0x348   : > { %v2556_v29 = vmax.f32 %v2540_v5, 0.0 }
 0x349   : > { %v2463_v53 = vpop.f32.mrf.mxu3 }
 0x34a   : > { %2572 = vst [vmem:[%s4344_s27 + $0x58] sm:$0xff] %v2556_v29  ;;  %v2505_v19 = vmul.f32 %v4327_v13, %v2463_v53 }
 0x34c   : > { %v2525_v51 = vadd.f32 %v4333_v28, %v2505_v19 }
 0x34e   : > { %v2541_v61 = vadd.f32 %v2525_v51, %v2485_v38 }
 0x350   : > { %v2557_v15 = vmax.f32 %v2541_v61, 0.0 }
 0x351   : > { %v2465_v8 = vpop.f32.mrf.mxu3 }
 0x352   : > { %2573 = vst [vmem:[%s4344_s27 + $0x60] sm:$0xff] %v2557_v15  ;;  %v2506_v10 = vmul.f32 %v4327_v13, %v2465_v8 }
 0x354   : > { %v2526_v21 = vadd.f32 %v4333_v28, %v2506_v10 }
 0x356   : > { %v2542_v3 = vadd.f32 %v2526_v21, %v2486_v35 }
 0x358   : > { %v2558_v7 = vmax.f32 %v2542_v3, 0.0 }
 0x359   : > { %v2468_v36 = vpop.f32.mrf.mxu3 }
 0x35a   : > { %2574 = vst [vmem:[%s4344_s27 + $0x68] sm:$0xff] %v2558_v7  ;;  %v2507_v2 = vmul.f32 %v4327_v13, %v2468_v36 }
 0x35c   : > { %v2527_v62 = vadd.f32 %v4333_v28, %v2507_v2 }
 0x35e   : > { %v2543_v11 = vadd.f32 %v2527_v62, %v2487_v46 }
 0x360   : > { %v2559_v40 = vmax.f32 %v2543_v11, 0.0 }
 0x361   : > { %v2470_v59 = vpop.f32.mrf.mxu3 }
 0x362   : > { %2575 = vst [vmem:[%s4344_s27 + $0x70] sm:$0xff] %v2559_v40  ;;  %v2508_v25 = vmul.f32 %v4327_v13, %v2470_v59 }
 0x364   : > { %v2528_v12 = vadd.f32 %v4333_v28, %v2508_v25 }
 0x366   : > { %v2544_v22 = vadd.f32 %v2528_v12, %v2488_v30 }
 0x368   : > { %v2560_v16 = vmax.f32 %v2544_v22, 0.0 }
 0x36a   : > { %2576 = vst [vmem:[%s4344_s27 + $0x78] sm:$0xff] %v2560_v16 }
 0x36b PF: > { %s22_s25 = sadd.s32 1, %s3452_s25   ;;  %s4481_s26 = sld [smem:[#allocation2_spill]] }
 0x36c   : > { %p19_p12 = scmp.ge.s32.totalorder %s22_s25, 6   ;;  %s4482_s30 = sld [smem:[#allocation3_spill]] }
 0x36d   : > { %s4483_s21 = smov %s3444_s23  ;;  %s4484_s22 = smov %s3448_s24 }
 0x36e   :  { %21 = sbr.rel (!%p19_p12) target bundleno = 3 (0x3), region = 106 }
 0x371   : > { %s4485_s23 = smov %s4481_s26 }
 0x372   : > { %s4486_s24 = smov %s4482_s30 }

</bundles_post_ra>
